<compile_context>
chip_gen: v7x
topology: tpu7x:2x2x1
jax: 0.10.0
libtpu: 0.0.40
codegen_flags: <defaults>
</compile_context>

<pallas_src>
import functools

import numpy as np
import jax
import jax.numpy as jnp
from jax.experimental import pallas as pl
from jax.experimental.pallas import tpu as pltpu


# ------------------------------- helpers ----------------------------------- #

def _round_up(n, m):
    return ((n + m - 1) // m) * m


_FUSED_X_BYTES = 2 << 20   # fuse stats+apply when x (as f32) is this small


def _choose_row_tile(n, d):
    # ~2 MiB f32 per (tile, D) block (>=85% of HBM roofline per measured data),
    # multiple of 128 rows, capped so in+out double-buffered blocks stay well
    # under the smallest (v5e, 16 MiB) scoped-VMEM default -> also safe on v7x.
    target = max(512, (2 << 20) // (4 * d))
    cap = max(128, (12 << 20) // (16 * d))
    return _round_up(min(target, cap), 128)


_PAR1 = pltpu.CompilerParams(dimension_semantics=("parallel",))
_PAR_ARB = pltpu.CompilerParams(dimension_semantics=("parallel", "arbitrary"))
_ARB1 = pltpu.CompilerParams(dimension_semantics=("arbitrary",))


def _row_mask(step_valid, row_start, n_rows, t):
    # [t, 1] bool: True for rows that really exist (and for valid grid steps).
    rows = jax.lax.broadcasted_iota(jnp.int32, (t, 1), 0)
    return jnp.logical_and(row_start + rows < n_rows, step_valid)


# ----------------------------- Pallas kernels ------------------------------ #

def _layernorm_kernel(x_ref, w_ref, b_ref, o_ref):
    # nn.LayerNorm(hidden_dim), eps=1e-5. Single-pass variance so the two
    # cross-lane reductions are independent. Ragged-tile garbage rows are
    # per-row only and their OOB writes are dropped by Pallas.
    x = x_ref[...].astype(jnp.float32)
    mean = jnp.mean(x, axis=-1, keepdims=True)
    ex2 = jnp.mean(x * x, axis=-1, keepdims=True)
    var = jnp.maximum(ex2 - mean * mean, 0.0)
    o_ref[...] = ((x - mean) * (jax.lax.rsqrt(var + 1e-5) * w_ref[...])
                  + b_ref[...]).astype(o_ref.dtype)


def _bn_stats_kernel(x_ref, part_ref, *, n_rows, num_tiles, tiles_per_core):
    # Per-core partial [sum(x), sum(x^2)] over row tiles (accumulated in the
    # resident output block). Ragged / overflow tiles are masked to zero.
    c = pl.program_id(0)
    j = pl.program_id(1)

    @pl.when(j == 0)
    def _():
        part_ref[...] = jnp.zeros_like(part_ref)

    t = x_ref.shape[0]
    step = c * tiles_per_core + j
    clamped = jnp.minimum(step, num_tiles - 1)        # mirrors the index_map clamp
    mask = _row_mask(step < num_tiles, clamped * t, n_rows, t)
    x = jnp.where(mask, x_ref[...].astype(jnp.float32), 0.0)
    xcat = jnp.concatenate([x, x * x], axis=-1)       # [T, 2D]
    # broadcast the [1, 2D] partial into all 8 sublane rows; finalize reads row 0
    part_ref[...] += jnp.sum(xcat, axis=0, keepdims=True)


def _gn_stats_kernel(seg_ref, x_ref, part_ref, *, n_rows, num_tiles,
                     tiles_per_core):
    # Per-core partial per-graph [sum(x), sum(x^2)] via a lane-dense in-vreg
    # one-hot ([B_pad, T]) and one fused MXU matmul per tile.
    c = pl.program_id(0)
    j = pl.program_id(1)

    @pl.when(j == 0)
    def _():
        part_ref[...] = jnp.zeros_like(part_ref)

    t = x_ref.shape[0]
    b_pad = part_ref.shape[0]
    step = c * tiles_per_core + j
    clamped = jnp.minimum(step, num_tiles - 1)
    mask = _row_mask(step < num_tiles, clamped * t, n_rows, t)
    x = jnp.where(mask, x_ref[...].astype(jnp.float32), 0.0)
    xcat = jnp.concatenate([x, x * x], axis=-1)                       # [T, 2D]
    oh = (jax.lax.broadcasted_iota(jnp.int32, (b_pad, t), 0)
          == seg_ref[...]).astype(jnp.float32)                        # [B_pad, T]
    part_ref[...] += jnp.dot(oh, xcat, preferred_element_type=jnp.float32)


def _affine_apply_kernel(x_ref, scale_ref, shift_ref, o_ref):
    # y = x * scale + shift (scale = w * rsqrt(var+eps), shift = b - mean*scale).
    o_ref[...] = (x_ref[...].astype(jnp.float32) * scale_ref[...]
                  + shift_ref[...]).astype(o_ref.dtype)


def _gn_apply_kernel(seg_ref, x_ref, stat_ref, b_ref, o_ref):
    # Gather the [B_pad, 2D] concat(mean*ms, w*inv_std) table back to nodes with
    # one lane-dense one-hot matmul (contraction over B_pad), then one FMA/elem.
    x = x_ref[...].astype(jnp.float32)                                # [T, D]
    t, d = x.shape
    b_pad = stat_ref.shape[0]
    oh = (jax.lax.broadcasted_iota(jnp.int32, (b_pad, t), 0)
          == seg_ref[...]).astype(jnp.float32)                        # [B_pad, T]
    g = jax.lax.dot_general(oh, stat_ref[...],
                            dimension_numbers=(((0,), (0,)), ((), ())),
                            preferred_element_type=jnp.float32)       # [T, 2D]
    o_ref[...] = ((x - g[:, :d]) * g[:, d:] + b_ref[...]).astype(o_ref.dtype)


def _bn_fused_kernel(x_ref, w_ref, b_ref, o_ref, *, inv_n):
    # Small-N fast path: stats + apply in one pass over x.
    x = x_ref[...].astype(jnp.float32)
    s = jnp.sum(x, axis=0, keepdims=True)
    ss = jnp.sum(x * x, axis=0, keepdims=True)
    mean = s * inv_n
    var = jnp.maximum(ss * inv_n - mean * mean, 0.0)
    scale = w_ref[...] * jax.lax.rsqrt(var + 1e-5)
    shift = b_ref[...] - mean * scale
    o_ref[...] = (x * scale + shift).astype(o_ref.dtype)


def _gn_fused_kernel(seg_ref, x_ref, inv_cnt_ref, w_ref, ms_ref, b_ref, o_ref):
    # Small-N fast path: per-graph stats + apply in one pass over x.
    x = x_ref[...].astype(jnp.float32)                                # [N, D]
    n, d = x.shape
    b_pad = inv_cnt_ref.shape[0]
    oh = (jax.lax.broadcasted_iota(jnp.int32, (b_pad, n), 0)
          == seg_ref[...]).astype(jnp.float32)                        # [B_pad, N]
    xcat = jnp.concatenate([x, x * x], axis=-1)                       # [N, 2D]
    sums = jnp.dot(oh, xcat, preferred_element_type=jnp.float32)      # [B_pad, 2D]
    inv_c = inv_cnt_ref[...]                                          # [B_pad, 1]
    ex = sums[:, :d] * inv_c
    ex2 = sums[:, d:] * inv_c
    ms = ms_ref[...]
    # E[(x - ms*mean)^2] = E[x^2] - ms*(2 - ms)*mean^2 (biased)
    var = jnp.maximum(ex2 - (2.0 - ms) * ms * ex * ex, 0.0)
    stat = jnp.concatenate([ex * ms, w_ref[...] * jax.lax.rsqrt(var + 1e-6)],
                           axis=-1)                                   # [B_pad, 2D]
    g = jax.lax.dot_general(oh, stat,
                            dimension_numbers=(((0,), (0,)), ((), ())),
                            preferred_element_type=jnp.float32)       # [N, 2D]
    o_ref[...] = ((x - g[:, :d]) * g[:, d:] + b_ref[...]).astype(o_ref.dtype)


# ------------------------------- wrapper ----------------------------------- #

class NormLayer:
    """JAX/Pallas port of ADA-GAD NormLayer (forward pass)."""

    def __init__(self, hidden_dim, norm_type):
        self.hidden_dim = hidden_dim
        self.norm_type = norm_type
        if norm_type not in ("batchnorm", "layernorm", "graphnorm"):
            raise NotImplementedError
        self.weight = jnp.ones((1, hidden_dim), jnp.float32)
        self.bias = jnp.zeros((1, hidden_dim), jnp.float32)
        if norm_type == "graphnorm":
            self.mean_scale = jnp.ones((1, hidden_dim), jnp.float32)
        self._seg_cache = {}   # int32 seg ids reused across layers / steps

    # -- segment-id plumbing (int32 seg ids, NOT a dense one-hot) ------------ #
    def _segments(self, counts, n_pad, b_pad):
        key = (tuple(counts), int(n_pad), int(b_pad))
        if key not in self._seg_cache:
            c = np.asarray(counts, np.int64)
            B = c.shape[0]
            seg = np.repeat(np.arange(B, dtype=np.int32), c)
            pad = n_pad - seg.shape[0]
            if pad:
                seg = np.concatenate([seg, np.full((pad,), B, np.int32)])
            inv_cnt = np.zeros((b_pad, 1), np.float32)
            inv_cnt[:B, 0] = 1.0 / c.astype(np.float32)
            self._seg_cache[key] = (jnp.asarray(seg[None, :]),   # [1, n_pad]
                                    jnp.asarray(inv_cnt))        # [b_pad, 1]
        return self._seg_cache[key]

    def __call__(self, graph, x, *, row_tile=None):
        N, D = x.shape
        out_shape = jax.ShapeDtypeStruct((N, D), x.dtype)
        param_spec = pl.BlockSpec((1, D), lambda i: (0, 0))

        # ------------------------------ layernorm --------------------------- #
        if self.norm_type == "layernorm":
            tile = _choose_row_tile(N, D) if row_tile is None else int(row_tile)
            if N <= tile:
                tile = N
            else:
                assert tile % 8 == 0
            num_tiles = pl.cdiv(N, tile)
            row_spec = pl.BlockSpec((tile, D), lambda i: (i, 0))
            return pl.pallas_call(
                _layernorm_kernel,
                out_shape=out_shape,
                grid=(num_tiles,),
                in_specs=[row_spec, param_spec, param_spec],
                out_specs=row_spec,
                compiler_params=_PAR1,
            )(x, self.weight, self.bias)

        # ------------------------------ batchnorm --------------------------- #
        if self.norm_type == "batchnorm":
            if row_tile is None and N * D * 4 <= _FUSED_X_BYTES:
                full_spec = pl.BlockSpec((N, D), lambda i: (0, 0))
                return pl.pallas_call(
                    functools.partial(_bn_fused_kernel, inv_n=1.0 / N),
                    out_shape=out_shape,
                    grid=(1,),
                    in_specs=[full_spec, param_spec, param_spec],
                    out_specs=full_spec,
                    compiler_params=_ARB1,
                )(x, self.weight, self.bias)

            tile = _choose_row_tile(N, D) if row_tile is None else int(row_tile)
            assert tile % 8 == 0
            num_tiles = pl.cdiv(N, tile)
            ncores = 2 if num_tiles >= 2 else 1   # v7x: 2 TCs; loop on v5e/v6e
            tpc = pl.cdiv(num_tiles, ncores)

            def x_map(c, j):
                return (jnp.minimum(c * tpc + j, num_tiles - 1), 0)

            part = pl.pallas_call(
                functools.partial(_bn_stats_kernel, n_rows=N,
                                  num_tiles=num_tiles, tiles_per_core=tpc),
                out_shape=jax.ShapeDtypeStruct((ncores * 8, 2 * D), jnp.float32),
                grid=(ncores, tpc),
                in_specs=[pl.BlockSpec((tile, D), x_map)],
                out_specs=pl.BlockSpec((8, 2 * D), lambda c, j: (c, 0)),
                compiler_params=_PAR_ARB,
            )(x)
            # tiny finalize in plain XLA on [ncores, 2D]
            tot = part.reshape(ncores, 8, 2 * D)[:, 0, :].sum(axis=0, keepdims=True)
            mean = tot[:, :D] * (1.0 / N)
            var = jnp.maximum(tot[:, D:] * (1.0 / N) - mean * mean, 0.0)
            scale = self.weight * jax.lax.rsqrt(var + 1e-5)
            shift = self.bias - mean * scale
            # TODO(synk): running_mean / running_var buffer updates (stateful
            # module side-effects) are omitted; this is the training-mode forward.

            row_spec = pl.BlockSpec((tile, D), lambda i: (i, 0))
            return pl.pallas_call(
                _affine_apply_kernel,
                out_shape=out_shape,
                grid=(num_tiles,),
                in_specs=[row_spec, param_spec, param_spec],
                out_specs=row_spec,
                compiler_params=_PAR1,
            )(x, scale, shift)

        # ------------------------------ graphnorm --------------------------- #
        counts = (graph["batch_num_nodes"] if isinstance(graph, dict)
                  else graph.batch_num_nodes)
        counts = [int(v) for v in counts]
        B = len(counts)
        assert sum(counts) == N
        b_pad = _round_up(B + 1, 8)   # +1 dummy segment for ragged-tile rows

        if (row_tile is None and N * D * 4 <= _FUSED_X_BYTES
                and b_pad * (N + 2 * D) * 4 <= (4 << 20)):
            seg_row, inv_cnt = self._segments(counts, N, b_pad)
            full_spec = pl.BlockSpec((N, D), lambda i: (0, 0))
            return pl.pallas_call(
                _gn_fused_kernel,
                out_shape=out_shape,
                grid=(1,),
                in_specs=[pl.BlockSpec((1, N), lambda i: (0, 0)),
                          full_spec,
                          pl.BlockSpec((b_pad, 1), lambda i: (0, 0)),
                          param_spec, param_spec, param_spec],
                out_specs=full_spec,
                compiler_params=_ARB1,
            )(seg_row, x, inv_cnt, self.weight, self.mean_scale, self.bias)

        tile = _choose_row_tile(N, D) if row_tile is None else int(row_tile)
        num_tiles = pl.cdiv(N, tile)
        assert num_tiles == 1 or tile % 128 == 0   # seg block is lane-tiled
        n_pad = num_tiles * tile
        seg_row, inv_cnt = self._segments(counts, n_pad, b_pad)
        ncores = 2 if num_tiles >= 2 else 1
        tpc = pl.cdiv(num_tiles, ncores)

        def x_map(c, j):
            return (jnp.minimum(c * tpc + j, num_tiles - 1), 0)

        def seg_map(c, j):
            return (0, jnp.minimum(c * tpc + j, num_tiles - 1))

        part = pl.pallas_call(
            functools.partial(_gn_stats_kernel, n_rows=N,
                              num_tiles=num_tiles, tiles_per_core=tpc),
            out_shape=jax.ShapeDtypeStruct((ncores * b_pad, 2 * D), jnp.float32),
            grid=(ncores, tpc),
            in_specs=[pl.BlockSpec((1, tile), seg_map),
                      pl.BlockSpec((tile, D), x_map)],
            out_specs=pl.BlockSpec((b_pad, 2 * D), lambda c, j: (c, 0)),
            compiler_params=_PAR_ARB,
        )(seg_row, x)
        # tiny finalize in plain XLA on [b_pad, 2D]
        tot = part.reshape(ncores, b_pad, 2 * D).sum(axis=0)
        ex = tot[:, :D] * inv_cnt
        ex2 = tot[:, D:] * inv_cnt
        ms = self.mean_scale
        var = jnp.maximum(ex2 - (2.0 - ms) * ms * ex * ex, 0.0)
        stat_cat = jnp.concatenate(
            [ex * ms, self.weight * jax.lax.rsqrt(var + 1e-6)], axis=-1)

        row_spec = pl.BlockSpec((tile, D), lambda i: (i, 0))
        return pl.pallas_call(
            _gn_apply_kernel,
            out_shape=out_shape,
            grid=(num_tiles,),
            in_specs=[pl.BlockSpec((1, tile), lambda i: (0, i)),
                      row_spec,
                      pl.BlockSpec((b_pad, 2 * D), lambda i: (0, 0)),
                      param_spec],
            out_specs=row_spec,
            compiler_params=_PAR1,
        )(seg_row, x, stat_cat, self.bias)


# ------------------------------ references --------------------------------- #

def _graphnorm_ref(x, batch_list, weight, bias, mean_scale):
    x = np.asarray(x, np.float64)
    counts = np.asarray(batch_list, np.float64)
    B = counts.shape[0]
    seg = np.repeat(np.arange(B), np.asarray(batch_list, np.int64))
    D = x.shape[1]
    mean = np.zeros((B, D)); np.add.at(mean, seg, x); mean /= counts[:, None]
    sub = x - mean[seg] * np.asarray(mean_scale, np.float64).reshape(1, -1)
    var = np.zeros((B, D)); np.add.at(var, seg, sub ** 2)
    std = np.sqrt(var / counts[:, None] + 1e-6)
    return (np.asarray(weight, np.float64).reshape(1, -1) * sub / std[seg]
            + np.asarray(bias, np.float64).reshape(1, -1))


def _layernorm_ref(x):
    x = np.asarray(x, np.float64)
    mean = x.mean(-1, keepdims=True)
    var = ((x - mean) ** 2).mean(-1, keepdims=True)
    return (x - mean) / np.sqrt(var + 1e-5)


def _batchnorm_ref(x):
    x = np.asarray(x, np.float64)
    mean = x.mean(0, keepdims=True)
    var = ((x - mean) ** 2).mean(0, keepdims=True)
    return (x - mean) / np.sqrt(var + 1e-5)


# --------------------------------- main ------------------------------------ #

if __name__ == "__main__":
    key = jax.random.PRNGKey(0)
    D = 128                                   # lane-dense hidden dim
    batch_num_nodes = [100, 60, 220]          # 3 graphs, 380 nodes total
    N = int(sum(batch_num_nodes))
    x = jax.random.normal(key, (N, D), dtype=jnp.float32)
    graph = {"batch_num_nodes": batch_num_nodes}

    # graphnorm: fused small-N path, then forced row_tile=128 to exercise the
    # two-phase path (3 ragged tiles, 2-core partial stats, clamped last step).
    gn = NormLayer(D, "graphnorm")
    gn_ref = _graphnorm_ref(np.asarray(x), batch_num_nodes,
                            gn.weight, gn.bias, gn.mean_scale)
    for rt in (None, 128):
        out = jax.block_until_ready(gn(graph, x, row_tile=rt))
        np.testing.assert_allclose(np.asarray(out), gn_ref, rtol=1e-4, atol=1e-4)

    # layernorm: single full block and tiled/ragged paths.
    ln = NormLayer(D, "layernorm")
    ln_ref = _layernorm_ref(x)
    for rt in (None, 128):
        out = jax.block_until_ready(ln(graph, x, row_tile=rt))
        np.testing.assert_allclose(np.asarray(out), ln_ref, rtol=1e-4, atol=1e-4)

    # batchnorm: fused and two-phase (2-core partial stats) paths.
    bn = NormLayer(D, "batchnorm")
    bn_ref = _batchnorm_ref(x)
    for rt in (None, 128):
        out = jax.block_until_ready(bn(graph, x, row_tile=rt))
        np.testing.assert_allclose(np.asarray(out), bn_ref, rtol=1e-4, atol=1e-4)

    print("KERNEL_OK")
</pallas_src>

<mosaic_0001>
module attributes {stable_mosaic.version = 11 : i64} {
  func.func @_gn_fused_kernel(%arg0: i32, %arg1: memref<1x380xi32, #tpu.memory_space<vmem>>, %arg2: memref<380x128xf32, #tpu.memory_space<vmem>>, %arg3: memref<8x1xf32, #tpu.memory_space<vmem>>, %arg4: memref<1x128xf32, #tpu.memory_space<vmem>>, %arg5: memref<1x128xf32, #tpu.memory_space<vmem>>, %arg6: memref<1x128xf32, #tpu.memory_space<vmem>>, %arg7: memref<380x128xf32, #tpu.memory_space<vmem>>) attributes {dimension_semantics = [#tpu.dimension_semantics<arbitrary>], iteration_bounds = array<i64: 1>, scalar_prefetch = 0 : i64, scratch_operands = 0 : i64, tpu.core_type = #tpu.core_type<tc>, window_params = [{pipeline_mode = #tpu.pipeline_mode<synchronous>, transform_indices = @transform_0, window_bounds = array<i64: 1, 380>}, {pipeline_mode = #tpu.pipeline_mode<synchronous>, transform_indices = @transform_1, window_bounds = array<i64: 380, 128>}, {pipeline_mode = #tpu.pipeline_mode<synchronous>, transform_indices = @transform_2, window_bounds = array<i64: 8, 1>}, {pipeline_mode = #tpu.pipeline_mode<synchronous>, transform_indices = @transform_3, window_bounds = array<i64: 1, 128>}, {pipeline_mode = #tpu.pipeline_mode<synchronous>, transform_indices = @transform_4, window_bounds = array<i64: 1, 128>}, {pipeline_mode = #tpu.pipeline_mode<synchronous>, transform_indices = @transform_5, window_bounds = array<i64: 1, 128>}, {pipeline_mode = #tpu.pipeline_mode<synchronous>, transform_indices = @transform_6, window_bounds = array<i64: 380, 128>}]} {
    %c0 = arith.constant 0 : index
    %c0_0 = arith.constant 0 : index
    %0 = vector.load %arg2[%c0, %c0_0] : memref<380x128xf32, #tpu.memory_space<vmem>>, vector<380x128xf32>
    %1 = tpu.iota {dimensions = array<i32: 0>} : vector<8x380xi32>
    %c0_1 = arith.constant 0 : index
    %c0_2 = arith.constant 0 : index
    %2 = vector.load %arg1[%c0_1, %c0_2] : memref<1x380xi32, #tpu.memory_space<vmem>>, vector<1x380xi32>
    %3 = vector.broadcast %2 : vector<1x380xi32> to vector<8x380xi32>
    %4 = arith.cmpi eq, %1, %3 : vector<8x380xi32>
    %5 = arith.extui %4 : vector<8x380xi1> to vector<8x380xi32>
    %6 = arith.sitofp %5 : vector<8x380xi32> to vector<8x380xf32>
    %7 = arith.mulf %0, %0 : vector<380x128xf32>
    %8 = tpu.concatenate %0, %7 in 1 : vector<380x128xf32>, vector<380x128xf32> -> vector<380x256xf32>
    %cst = arith.constant dense<0.000000e+00> : vector<8x256xf32>
    %9 = tpu.matmul %6, %8, %cst {dimension_numbers = #tpu.dot_dimension_numbers<[1], [0], [0], [1], [0, 0, 1, 1], [], []>} : vector<8x380xf32>, vector<380x256xf32>, vector<8x256xf32> -> vector<8x256xf32>
    %c0_3 = arith.constant 0 : index
    %c0_4 = arith.constant 0 : index
    %10 = vector.load %arg3[%c0_3, %c0_4] : memref<8x1xf32, #tpu.memory_space<vmem>>, vector<8x1xf32>
    %11 = vector.extract_strided_slice %9 {offsets = [0, 0], sizes = [8, 128], strides = [1, 1]} : vector<8x256xf32> to vector<8x128xf32>
    %12 = vector.broadcast %10 : vector<8x1xf32> to vector<8x128xf32>
    %13 = arith.mulf %11, %12 : vector<8x128xf32>
    %14 = vector.extract_strided_slice %9 {offsets = [0, 128], sizes = [8, 128], strides = [1, 1]} : vector<8x256xf32> to vector<8x128xf32>
    %15 = vector.broadcast %10 : vector<8x1xf32> to vector<8x128xf32>
    %16 = arith.mulf %14, %15 : vector<8x128xf32>
    %c0_5 = arith.constant 0 : index
    %c0_6 = arith.constant 0 : index
    %17 = vector.load %arg5[%c0_5, %c0_6] : memref<1x128xf32, #tpu.memory_space<vmem>>, vector<1x128xf32>
    %cst_7 = arith.constant 2.000000e+00 : f32
    %18 = vector.broadcast %cst_7 : f32 to vector<1x128xf32>
    %19 = arith.subf %18, %17 : vector<1x128xf32>
    %20 = arith.mulf %19, %17 : vector<1x128xf32>
    %21 = vector.broadcast %20 : vector<1x128xf32> to vector<8x128xf32>
    %22 = arith.mulf %21, %13 : vector<8x128xf32>
    %23 = arith.mulf %22, %13 : vector<8x128xf32>
    %24 = arith.subf %16, %23 : vector<8x128xf32>
    %cst_8 = arith.constant 0.000000e+00 : f32
    %25 = vector.broadcast %cst_8 : f32 to vector<8x128xf32>
    %26 = arith.maximumf %24, %25 : vector<8x128xf32>
    %27 = vector.broadcast %17 : vector<1x128xf32> to vector<8x128xf32>
    %28 = arith.mulf %13, %27 : vector<8x128xf32>
    %c0_9 = arith.constant 0 : index
    %c0_10 = arith.constant 0 : index
    %29 = vector.load %arg4[%c0_9, %c0_10] : memref<1x128xf32, #tpu.memory_space<vmem>>, vector<1x128xf32>
    %cst_11 = arith.constant 9.99999997E-7 : f32
    %30 = vector.broadcast %cst_11 : f32 to vector<8x128xf32>
    %31 = arith.addf %26, %30 : vector<8x128xf32>
    %32 = math.rsqrt %31 : vector<8x128xf32>
    %33 = vector.broadcast %29 : vector<1x128xf32> to vector<8x128xf32>
    %34 = arith.mulf %33, %32 : vector<8x128xf32>
    %35 = tpu.concatenate %28, %34 in 1 : vector<8x128xf32>, vector<8x128xf32> -> vector<8x256xf32>
    %cst_12 = arith.constant dense<0.000000e+00> : vector<380x256xf32>
    %36 = tpu.matmul %6, %35, %cst_12 {dimension_numbers = #tpu.dot_dimension_numbers<[0], [0], [1], [1], [0, 1, 1, 1], [], []>} : vector<8x380xf32>, vector<8x256xf32>, vector<380x256xf32> -> vector<380x256xf32>
    %37 = vector.extract_strided_slice %36 {offsets = [0, 0], sizes = [380, 128], strides = [1, 1]} : vector<380x256xf32> to vector<380x128xf32>
    %38 = arith.subf %0, %37 : vector<380x128xf32>
    %39 = vector.extract_strided_slice %36 {offsets = [0, 128], sizes = [380, 128], strides = [1, 1]} : vector<380x256xf32> to vector<380x128xf32>
    %40 = arith.mulf %38, %39 : vector<380x128xf32>
    %c0_13 = arith.constant 0 : index
    %c0_14 = arith.constant 0 : index
    %41 = vector.load %arg6[%c0_13, %c0_14] : memref<1x128xf32, #tpu.memory_space<vmem>>, vector<1x128xf32>
    %42 = vector.broadcast %41 : vector<1x128xf32> to vector<380x128xf32>
    %43 = arith.addf %40, %42 : vector<380x128xf32>
    %c0_15 = arith.constant 0 : index
    %c0_16 = arith.constant 0 : index
    %44 = vector.load %arg7[%c0_15, %c0_16] : memref<380x128xf32, #tpu.memory_space<vmem>>, vector<380x128xf32>
    tpu.vector_store %arg7[%c0_15, %c0_16], %43 {strides = array<i32>} : memref<380x128xf32, #tpu.memory_space<vmem>>, vector<380x128xf32>,
    return
  }
  func.func @transform_0(%arg0: i32) -> (i32, i32) {
    %c0_i32 = arith.constant 0 : i32
    %c0_i32_0 = arith.constant 0 : i32
    %c0_i32_1 = arith.constant 0 : i32
    return %c0_i32, %c0_i32_0 : i32, i32
  }
  func.func @transform_1(%arg0: i32) -> (i32, i32) {
    %c0_i32 = arith.constant 0 : i32
    %c0_i32_0 = arith.constant 0 : i32
    %c0_i32_1 = arith.constant 0 : i32
    return %c0_i32, %c0_i32_0 : i32, i32
  }
  func.func @transform_2(%arg0: i32) -> (i32, i32) {
    %c0_i32 = arith.constant 0 : i32
    %c0_i32_0 = arith.constant 0 : i32
    %c0_i32_1 = arith.constant 0 : i32
    return %c0_i32, %c0_i32_0 : i32, i32
  }
  func.func @transform_3(%arg0: i32) -> (i32, i32) {
    %c0_i32 = arith.constant 0 : i32
    %c0_i32_0 = arith.constant 0 : i32
    %c0_i32_1 = arith.constant 0 : i32
    return %c0_i32, %c0_i32_0 : i32, i32
  }
  func.func @transform_4(%arg0: i32) -> (i32, i32) {
    %c0_i32 = arith.constant 0 : i32
    %c0_i32_0 = arith.constant 0 : i32
    %c0_i32_1 = arith.constant 0 : i32
    return %c0_i32, %c0_i32_0 : i32, i32
  }
  func.func @transform_5(%arg0: i32) -> (i32, i32) {
    %c0_i32 = arith.constant 0 : i32
    %c0_i32_0 = arith.constant 0 : i32
    %c0_i32_1 = arith.constant 0 : i32
    return %c0_i32, %c0_i32_0 : i32, i32
  }
  func.func @transform_6(%arg0: i32) -> (i32, i32) {
    %c0_i32 = arith.constant 0 : i32
    %c0_i32_0 = arith.constant 0 : i32
    %c0_i32_1 = arith.constant 0 : i32
    return %c0_i32, %c0_i32_0 : i32, i32
  }
}

</mosaic_0001>

<bundles_post_ra>
// kernel: tpu_custom_call.1
= control target key start
LH: loop header
LB: loop body
LE: loop exit
PB: predicated region body
PF: predicated region fallthrough
CT: control target
= control target key end

     0   :  { %11 = vsyncpa [#allocation3], 0  ;;  %s1974_s0 = inlined_call_operand.vmem [shape: s32[1,380], index: 0, kind: input, shape index: {}]   ;;  %s1975_s1 = inlined_call_operand.hbm [shape: f32[380,128], index: 1, kind: input, shape index: {}]   ;;  %s1976_s2 = inlined_call_operand.vmem [shape: f32[8,1], index: 2, kind: input, shape index: {}]   ;;  %s1977_s3 = inlined_call_operand.vmem [shape: f32[1,128], index: 3, kind: input, shape index: {}]   ;;  %s1978_s4 = inlined_call_operand.vmem [shape: f32[1,128], index: 4, kind: input, shape index: {}]   ;;  %s1979_s5 = inlined_call_operand.vmem [shape: f32[1,128], index: 5, kind: input, shape index: {}]   ;;  %s1980_s6 = inlined_call_operand.hbm [shape: f32[380,128], index: 6, kind: output, shape index: {}]  }
   0x1   :  { %12 = vsyncpa [#allocation4], 0  ;;  %s1378_s21 = smov [#allocation2]   ;;  %s1330_s25 = scalar_lea.hbm %s1975_s1, 6144 }
   0x2   :  { %s20_s22 = sshll.u32 %s1378_s21, 4  ;;  %p1331_p0 = scmp.ne.s32.totalorder %s1975_s1, %s1330_s25  ;;  %s21_s22 = int_to_ptr.vmem [resolvable:$true] %s20_s22 }
   0x3   :  { %p1334_p1 = scmp.lt.u32.totalorder %s1330_s25, %s1975_s1 }
   0x5   :  { %p1336_p2 = pnand %p1334_p1, %p1331_p0 }
   0x7   :  { %1339 = shalt.err (!%p1336_p2)
}
   0x8   :  { %s1340_s30 = scalar_lea.vmem %s21_s22, 6144  ;;  %p1345_p4 = scmp.lt.s32.totalorder %s21_s22, %s21_s22 }
   0x9   :  { %p1341_p3 = scmp.ne.s32.totalorder %s21_s22, %s1340_s30  ;;  %p1346_p5 = scmp.lt.s32.totalorder %s1340_s30, %s1340_s30 }
   0xb   :  { %p1347_p6 = por %p1346_p5, %p1345_p4 }
   0xd   :  { %p1348_p7 = pnand %p1347_p6, %p1341_p3 }
   0xf   :  { %1351 = shalt.err (!%p1348_p7)
}
  0x10   :  { %s1379_s7 = smov 128   ;;  %s1380_s8 = smov 8  }
  0x11   :  { %26 = dma.hbm_to_vmem [thread:$0]  %s1975_s1, 6144, %s21_s22, [#allocation3], %s1379_s7, %s1379_s7, %s1380_s8  }
  0x12   :  { %1374 = dma.done.wait [#allocation3], 6144  }
  0x13   :  { %1375 = vsyncadd [#allocation3], 4294961152  ;;  %v1381_v0 = vmov 0   ;;  %v1981_v1 = vmov 0.0   ;;  %v1437_v2 = vld [vmem:[#allocation2] sm:$0xff]  ;;  %v1439_v3 = vld [vmem:[#allocation2 + $0x8] sm:$0xff]  ;;  %v86_v19 = vlaneseq }
  0x14   :  { %1327 = vset.pattern.permute.xlu0 %v1381_v0  ;;  %720 = vmatprep.mubr.f32.mxu1 %v1981_v1  ;;  %v1441_v4 = vld [vmem:[#allocation2 + $0x10] sm:$0xff]  ;;  %v110_v5 = vmul.f32 %v1437_v2, %v1437_v2  ;;  %v111_v6 = vmul.f32 %v1439_v3, %v1439_v3  ;;  %v1447_v7 = vld [vmem:[#allocation2 + $0x18] sm:$0xff]  ;;  %v1451_v9 = vld [vmem:[#allocation2 + $0x20] sm:$0xff]  ;;  %v1219_v11 = vpack.c.bf16 %v1439_v3, %v1437_v2  ;;  %v1383_v47 = vmov 1.0  }
  0x15   :  { %v112_v8 = vmul.f32 %v1441_v4, %v1441_v4  ;;  %v1453_v10 = vld [vmem:[#allocation2 + $0x28] sm:$0xff]  ;;  %v113_v12 = vmul.f32 %v1447_v7, %v1447_v7  ;;  %v114_v14 = vmul.f32 %v1451_v9, %v1451_v9  ;;  %v1463_v17 = vld [vmem:[#allocation2 + $0x30] sm:$0xff]  ;;  %v1465_v18 = vld [vmem:[#allocation2 + $0x38] sm:$0xff]  ;;  %v1223_v20 = vpack.c.bf16 %v1447_v7, %v1441_v4 }
  0x16   :  { %v1217_v13 = vpack.c.bf16 %v111_v6, %v110_v5  ;;  %v115_v15 = vmul.f32 %v1453_v10, %v1453_v10  ;;  %v116_v22 = vmul.f32 %v1463_v17, %v1463_v17  ;;  %v117_v23 = vmul.f32 %v1465_v18, %v1465_v18  ;;  %v1473_v24 = vld [vmem:[#allocation2 + $0x40] sm:$0xff]  ;;  %v1475_v25 = vld [vmem:[#allocation2 + $0x48] sm:$0xff]  ;;  %v1485_v31 = vld [vmem:[#allocation2 + $0x50] sm:$0xff] }
  0x17   :  { %v1221_v16 = vpack.c.bf16 %v113_v12, %v112_v8  ;;  %v1477_v26 = vshrl.u32 %v86_v19, 7  ;;  %v1227_v27 = vpack.c.bf16 %v1453_v10, %v1451_v9  ;;  %v118_v29 = vmul.f32 %v1473_v24, %v1473_v24  ;;  %v1487_v32 = vld [vmem:[#allocation2 + $0x58] sm:$0xff]  ;;  %v1493_v34 = vld [vmem:[%s1974_s0] sm:$0x7]  ;;  %v1503_v40 = vld [vmem:[#allocation2 + $0x68] sm:$0xff] }
  0x18   :  { %1218 = vmatprep.subr.bf16.mxu0 %v1217_v13  ;;  %v1225_v21 = vpack.c.bf16 %v115_v15, %v114_v14  ;;  %v1229_v28 = vpack.c.bf16 %v117_v23, %v116_v22  ;;  %v119_v30 = vmul.f32 %v1475_v25, %v1475_v25  ;;  %v1231_v35 = vpack.c.bf16 %v1465_v18, %v1463_v17  ;;  %v1501_v39 = vld [vmem:[#allocation2 + $0x60] sm:$0xff]  ;;  %v1518_v49 = vld [vmem:[#allocation2 + $0x70] sm:$0xff]  ;;  %v1520_v50 = vld [vmem:[#allocation2 + $0x78] sm:$0xff] }
  0x19   :  { %1220 = vmatpush1.bf16.msra.mxu0 %v1219_v11  ;;  %v95_v33 = vsub.s32 1, %v1477_v26  ;;  %v120_v37 = vmul.f32 %v1485_v31, %v1485_v31  ;;  %v121_v38 = vmul.f32 %v1487_v32, %v1487_v32  ;;  %v311_v42 = vld [vmem:[%s1976_s2] sm:$0xff]  ;;  %v1235_v43 = vpack.c.bf16 %v1475_v25, %v1473_v24  ;;  %v1530_v56 = vld [vmem:[#allocation2 + $0x88] sm:$0xff]  ;;  %v1538_v61 = vld [vmem:[#allocation2 + $0x90] sm:$0xff] }
  0x1a   :  { %1222 = vmatprep.subr.bf16.mxu0 %v1221_v16  ;;  %v1233_v36 = vpack.c.bf16 %v119_v30, %v118_v29  ;;  %314 = vperm.xlu0 %1327, %v311_v42   ;;  %v122_v45 = vmul.f32 %v1501_v39, %v1501_v39  ;;  %v123_v46 = vmul.f32 %v1503_v40, %v1503_v40  ;;  %v1528_v55 = vld [vmem:[#allocation2 + $0x80] sm:$0xff]  ;;  %v1540_v62 = vld [vmem:[#allocation2 + $0x98] sm:$0xff]  ;;  %v1550_v11 = vld [vmem:[#allocation2 + $0xa8] sm:$0xff]  ;;  %v1559_v16 = vsub.s32 0, %v1477_v26 }
  0x1b   :  { %v96_v41 = vrot.slane %v1493_v34, %v95_v33  ;;  %v1237_v44 = vpack.c.bf16 %v121_v38, %v120_v37  ;;  %v1239_v51 = vpack.c.bf16 %v1487_v32, %v1485_v31  ;;  %v124_v53 = vmul.f32 %v1518_v49, %v1518_v49  ;;  %v1548_v8 = vld [vmem:[#allocation2 + $0xa0] sm:$0xff]  ;;  %v1561_v19 = vld [vmem:[#allocation2 + $0xb0] sm:$0xff]  ;;  %v1575_v30 = vld [vmem:[#allocation2 + $0xc8] sm:$0xff] }
  0x1c   :  { %v1241_v52 = vpack.c.bf16 %v123_v46, %v122_v45  ;;  %v125_v54 = vmul.f32 %v1520_v50, %v1520_v50  ;;  %v1243_v57 = vpack.c.bf16 %v1503_v40, %v1501_v39  ;;  %v126_v59 = vmul.f32 %v1528_v55, %v1528_v55  ;;  %v1573_v29 = vld [vmem:[#allocation2 + $0xc0] sm:$0xff]  ;;  %v1590_v42 = vld [vmem:[#allocation2 + $0xd8] sm:$0xff] }
  0x1d   :  { %1224 = vmatpush1.bf16.msra.mxu0 %v1223_v20  ;;  %vm102_vm0 = vcmp.eq.s32.totalorder %v1477_v26, %v96_v41  ;;  %v127_v60 = vmul.f32 %v1530_v56, %v1530_v56  ;;  %v1247_v63 = vpack.c.bf16 %v1520_v50, %v1518_v49  ;;  %v128_v5 = vmul.f32 %v1538_v61, %v1538_v61  ;;  %v1563_v20 = vld [vmem:[#allocation2 + $0xb8] sm:$0xff]  ;;  %v1588_v41 = vld [vmem:[#allocation2 + $0xd0] sm:$0xff] }
  0x1e   :  { %1226 = vmatprep.subr.bf16.mxu0 %v1225_v21  ;;  %1162 = vmatprep.mubr.msk.f32.mxu0 %vm102_vm0, %v1383_v47  ;;  %v1160_v48 = vsel %vm102_vm0, 1.0, %v1981_v1  ;;  %v1245_v58 = vpack.c.bf16 %v125_v54, %v124_v53  ;;  %v129_v6 = vmul.f32 %v1540_v62, %v1540_v62  ;;  %v1251_v12 = vpack.c.bf16 %v1530_v56, %v1528_v55 }
  0x1f   :  { %381 = vxpose.xlu1.b32.start.end [1/1] (short) %v1160_v48, 128  ;;  %v1249_v0 = vpack.c.bf16 %v127_v60, %v126_v59  ;;  %v130_v14 = vmul.f32 %v1548_v8, %v1548_v8  ;;  %v131_v15 = vmul.f32 %v1550_v11, %v1550_v11  ;;  %v1255_v21 = vpack.c.bf16 %v1540_v62, %v1538_v61  ;;  %v1611_v59 = vld [vmem:[#allocation2 + $0xf0] sm:$0xff]  ;;  %v1613_v60 = vld [vmem:[#allocation2 + $0xf8] sm:$0xff] }
  0x20   :  { %v1253_v13 = vpack.c.bf16 %v129_v6, %v128_v5  ;;  %v132_v23 = vmul.f32 %v1561_v19, %v1561_v19  ;;  %v1259_v33 = vpack.c.bf16 %v1550_v11, %v1548_v8  ;;  %v135_v37 = vmul.f32 %v1575_v30, %v1575_v30 }
  0x21   :  { %1228 = vmatpush1.bf16.msra.mxu0 %v1227_v27  ;;  %v1257_v22 = vpack.c.bf16 %v131_v15, %v130_v14  ;;  %v133_v27 = vmul.f32 %v1563_v20, %v1563_v20  ;;  %v136_v46 = vmul.f32 %v1588_v41, %v1588_v41  ;;  %v137_v48 = vmul.f32 %v1590_v42, %v1590_v42 }
  0x22   :  { %1230 = vmatprep.subr.bf16.mxu0 %v1229_v28  ;;  %v92_v28 = vrot.slane %v1493_v34, %v1559_v16  ;;  %v1267_v53 = vpack.c.bf16 %v1575_v30, %v1573_v29  ;;  %v140_v5 = vmul.f32 %v1611_v59, %v1611_v59  ;;  %v141_v6 = vmul.f32 %v1613_v60, %v1613_v60 }
  0x23   :  { %v1269_v54 = vpack.c.bf16 %v137_v48, %v136_v46  ;;  %vm162_vm3 = vcmask 1043456   ;;  %vm1384_vm4 = vmmov 1   ;;  %vm158_vm6 = vcmask 1014784  }
  0x24   :  { %vm1584_vm1 = vcmp.eq.s32.totalorder %v1477_v26, %v92_v28  ;;  %v1277_v15 = vpack.c.bf16 %v141_v6, %v140_v5  ;;  %v1279_v28 = vpack.c.bf16 %v1613_v60, %v1611_v59  ;;  %v1666_v6 = vld [vmem:[#allocation2 + $0x140] sm:$0xff]  ;;  %vm1310_vm5 = vmpackc.low %vm162_vm3, %vm1384_vm4  ;;  %vm445_vm7 = vcmask 64512  }
  0x25   :  { %1232 = vmatpush1.bf16.msra.mxu0 %v1231_v35  ;;  %v1261_v35 = vpack.c.bf16 %v133_v27, %v132_v23  ;;  %v1631_v23 = vld [vmem:[#allocation2 + $0x110] sm:$0xff]  ;;  %v1633_v27 = vld [vmem:[#allocation2 + $0x118] sm:$0xff]  ;;  %2009 = vst [vmem:[#allocation16_spill] sm:$0xff] %v1666_v6 }
  0x26   :  { %1234 = vmatprep.subr.bf16.mxu0 %v1233_v36  ;;  %v134_v36 = vmul.f32 %v1573_v29, %v1573_v29  ;;  %2003 = vst [vmem:[#allocation10_spill] sm:$0xff] %v1631_v23  ;;  %2004 = vst [vmem:[#allocation11_spill] sm:$0xff] %v1633_v27 }
  0x28   :  { %v1265_v45 = vpack.c.bf16 %v135_v37, %v134_v36  ;;  %v145_v36 = vmul.f32 %v1633_v27, %v1633_v27  ;;  %v1641_v37 = vld [vmem:[#allocation2 + $0x120] sm:$0xff] }
  0x29   :  { %1236 = vmatpush1.bf16.msra.mxu0 %v1235_v43  ;;  %v1159_v43 = vsel %vm1584_vm1, 1.0, %v1981_v1  ;;  %2005 = vst [vmem:[#allocation12_spill] sm:$0xff] %v1641_v37  ;;  %v146_v46 = vmul.f32 %v1641_v37, %v1641_v37 }
  0x2a   :  { %1238 = vmatprep.subr.bf16.mxu0 %v1237_v44  ;;  %v1263_v44 = vpack.c.bf16 %v1563_v20, %v1561_v19 }
  0x2d   :  { %1240 = vmatpush1.bf16.msra.mxu0 %v1239_v51  ;;  %v1601_v51 = vld [vmem:[#allocation2 + $0xe0] sm:$0xff] }
  0x2e   :  { %1242 = vmatprep.subr.bf16.mxu0 %v1241_v52  ;;  %v1603_v52 = vld [vmem:[#allocation2 + $0xe8] sm:$0xff] }
  0x2f   :  { %v1275_v14 = vpack.c.bf16 %v1603_v52, %v1601_v51 }
  0x31   :  { %1244 = vmatpush1.bf16.msra.mxu0 %v1243_v57  ;;  %v138_v57 = vmul.f32 %v1601_v51, %v1601_v51 }
  0x32   :  { %1246 = vmatprep.subr.bf16.mxu0 %v1245_v58  ;;  %v139_v58 = vmul.f32 %v1603_v52, %v1603_v52 }
  0x35   :  { %1248 = vmatpush1.bf16.msra.mxu0 %v1247_v63  ;;  %v1271_v63 = vpack.c.bf16 %v1590_v42, %v1588_v41 }
  0x36   :  { %1250 = vmatprep.subr.bf16.mxu0 %v1249_v0  ;;  %v1273_v0 = vpack.c.bf16 %v139_v58, %v138_v57  ;;  %v99_v57 = vsub.s32 2, %v1477_v26  ;;  %v1287_v58 = vpack.c.bf16 %v1633_v27, %v1631_v23 }
  0x38   :  { %349 = vxpose.xlu0.b32.start.end [1/1] (short) %v1159_v43, 128  ;;  %v1643_v43 = vld [vmem:[#allocation2 + $0x128] sm:$0xff] }
  0x39   :  { %1252 = vmatpush1.bf16.msra.mxu0 %v1251_v12  ;;  %v1621_v12 = vld [vmem:[#allocation2 + $0x100] sm:$0xff]  ;;  %2006 = vst [vmem:[#allocation13_spill] sm:$0xff] %v1643_v43  ;;  %v147_v48 = vmul.f32 %v1643_v43, %v1643_v43  ;;  %v1291_v38 = vpack.c.bf16 %v1643_v43, %v1641_v37 }
  0x3a   :  { %1254 = vmatprep.subr.bf16.mxu0 %v1253_v13  ;;  %2001 = vst [vmem:[#allocation8_spill] sm:$0xff] %v1621_v12  ;;  %v1623_v13 = vld [vmem:[#allocation2 + $0x108] sm:$0xff] }
  0x3b   :  { %2002 = vst [vmem:[#allocation9_spill] sm:$0xff] %v1623_v13 }
  0x3d   :  { %1256 = vmatpush1.bf16.msra.mxu0 %v1255_v21  ;;  %v142_v21 = vmul.f32 %v1621_v12, %v1621_v12 }
  0x3e   :  { %1258 = vmatprep.subr.bf16.mxu0 %v1257_v22  ;;  %v143_v22 = vmul.f32 %v1623_v13, %v1623_v13 }
  0x41   :  { %1260 = vmatpush1.bf16.msra.mxu0 %v1259_v33  ;;  %v1281_v33 = vpack.c.bf16 %v143_v22, %v142_v21  ;;  %v150_v21 = vmul.f32 %v1666_v6, %v1666_v6 }
  0x42   :  { %1262 = vmatprep.subr.bf16.mxu0 %v1261_v35  ;;  %v144_v35 = vmul.f32 %v1631_v23, %v1631_v23 }
  0x45   :  { %1264 = vmatpush1.bf16.msra.mxu0 %v1263_v44  ;;  %v1283_v44 = vpack.c.bf16 %v1623_v13, %v1621_v12 }
  0x46   :  { %1266 = vmatprep.subr.bf16.mxu0 %v1265_v45  ;;  %v1285_v45 = vpack.c.bf16 %v145_v36, %v144_v35 }
  0x49   :  { %1268 = vmatpush1.bf16.msra.mxu0 %v1267_v53  ;;  %v1651_v53 = vld [vmem:[#allocation2 + $0x130] sm:$0xff] }
  0x4a   :  { %1270 = vmatprep.subr.bf16.mxu0 %v1269_v54  ;;  %2007 = vst [vmem:[#allocation14_spill] sm:$0xff] %v1651_v53  ;;  %v1653_v54 = vld [vmem:[#allocation2 + $0x138] sm:$0xff] }
  0x4b   :  { %2008 = vst [vmem:[#allocation15_spill] sm:$0xff] %v1653_v54  ;;  %v149_v5 = vmul.f32 %v1653_v54, %v1653_v54 }
  0x4d   :  { %1272 = vmatpush1.bf16.msra.mxu0 %v1271_v63  ;;  %v1289_v63 = vpack.c.bf16 %v147_v48, %v146_v46  ;;  %v1690_v46 = vld [vmem:[#allocation2 + $0x168] sm:$0xff] }
  0x4e   :  { %1274 = vmatprep.subr.bf16.mxu0 %v1273_v0  ;;  %v148_v0 = vmul.f32 %v1651_v53, %v1651_v53  ;;  %2014 = vst [vmem:[#allocation21_spill] sm:$0xff] %v1690_v46 }
  0x51   :  { %1276 = vmatpush1.bf16.msra.mxu0 %v1275_v14  ;;  %v1668_v14 = vld [vmem:[#allocation2 + $0x148] sm:$0xff] }
  0x52   :  { %1278 = vmatprep.subr.bf16.mxu0 %v1277_v15  ;;  %2010 = vst [vmem:[#allocation17_spill] sm:$0xff] %v1668_v14  ;;  %v1293_v15 = vpack.c.bf16 %v149_v5, %v148_v0  ;;  %v151_v22 = vmul.f32 %v1668_v14, %v1668_v14  ;;  %v1699_v0 = vld [vmem:[#allocation2 + $0x170] sm:$0xff]  ;;  %v1701_v5 = vld [vmem:[#allocation2 + $0x178] sm:$0xf] }
  0x53   :  { %2015 = vst [vmem:[#allocation22_spill] sm:$0xff] %v1699_v0  ;;  %2016 = vst [vmem:[#allocation23_spill] sm:$0xff] %v1701_v5 }
  0x54   :  { %v1297_v35 = vpack.c.bf16 %v151_v22, %v150_v21  ;;  %v157_v21 = vmul.f32 %v1701_v5, %v1701_v5 }
  0x55   :  { %1280 = vmatpush1.bf16.msra.mxu0 %v1279_v28  ;;  %v1677_v28 = vld [vmem:[#allocation2 + $0x150] sm:$0xff] }
  0x56   :  { %1282 = vmatprep.subr.bf16.mxu0 %v1281_v33  ;;  %2011 = vst [vmem:[#allocation18_spill] sm:$0xff] %v1677_v28  ;;  %v1679_v33 = vld [vmem:[#allocation2 + $0x158] sm:$0xff]  ;;  %v152_v36 = vmul.f32 %v1677_v28, %v1677_v28 }
  0x57   :  { %2012 = vst [vmem:[#allocation19_spill] sm:$0xff] %v1679_v33 }
  0x58   :  { %1163 = vmatmul.mubr.msk.f32.vlgmr.msra.gmra.mrb[0].mxu0 %vm1584_vm1, %v1383_v47  ;;  %v100_v47 = vrot.slane %v1493_v34, %v99_v57  ;;  %v1295_v34 = vpack.c.bf16 %v1653_v54, %v1651_v53 }
  0x59   :  { %1284 = vmatpush1.bf16.msra.mxu0 %v1283_v44  ;;  %304 = vmatprep.mubr.f32.mxu0 %v1981_v1  ;;  %v153_v44 = vmul.f32 %v1679_v33, %v1679_v33 }
  0x5a   :  { %1286 = vmatprep.subr.bf16.mxu0 %v1285_v45  ;;  %vm103_vm2 = vcmp.eq.s32.totalorder %v1477_v26, %v100_v47  ;;  %v1688_v45 = vld [vmem:[#allocation2 + $0x160] sm:$0xff]  ;;  %v1299_v26 = vpack.c.bf16 %v1668_v14, %v1666_v6  ;;  %v1303_v47 = vpack.c.bf16 %v1679_v33, %v1677_v28 }
  0x5b   :  { %2013 = vst [vmem:[#allocation20_spill] sm:$0xff] %v1688_v45  ;;  %v1161_v48 = vsel %vm103_vm2, 1.0, %v1981_v1  ;;  %v1301_v57 = vpack.c.bf16 %v153_v44, %v152_v36  ;;  %v1307_v22 = vpack.c.bf16 %v1690_v46, %v1688_v45 }
  0x5c   :  { %413 = vxpose.xlu1.b32.start.end [1/1] (short) %v1161_v48, 128 }
  0x5d   :  { %1288 = vmatpush1.bf16.msra.mxu0 %v1287_v58  ;;  %v154_v58 = vmul.f32 %v1688_v45, %v1688_v45 }
  0x5e   :  { %1290 = vmatprep.subr.bf16.mxu0 %v1289_v63  ;;  %v155_v63 = vmul.f32 %v1690_v46, %v1690_v46 }
  0x61   :  { %1292 = vmatpush1.bf16.msra.mxu0 %v1291_v38  ;;  %v1305_v38 = vpack.c.bf16 %v155_v63, %v154_v58 }
  0x62   :  { %1294 = vmatprep.subr.bf16.mxu0 %v1293_v15  ;;  %v156_v15 = vmul.f32 %v1699_v0, %v1699_v0 }
  0x65   :  { %1296 = vmatpush1.bf16.msra.mxu0 %v1295_v34  ;;  %v1309_v34 = vpack.c.bf16 %v157_v21, %v156_v15  ;;  %v319_v21 = vld [vmem:[%s1978_s4] sm:$0x1] }
  0x66   :  { %1298 = vmatprep.subr.bf16.mxu0 %v1297_v35  ;;  %v1312_v35 = vpack.c.bf16 %v1701_v5, %v1699_v0  ;;  %v336_v12 = vrot.slane %v319_v21, %v1559_v16 }
  0x69   :  { %1300 = vmatpush1.bf16.msra.mxu0 %v1299_v26 }
  0x6a   :  { %1302 = vmatprep.subr.bf16.mxu0 %v1301_v57 }
  0x6d   :  { %1304 = vmatpush1.bf16.msra.mxu0 %v1303_v47 }
  0x6e   :  { %1306 = vmatprep.subr.bf16.mxu0 %v1305_v38 }
  0x71   :  { %1308 = vmatpush1.bf16.msra.mxu0 %v1307_v22  ;;  %v320_v22 = vsub.f32 2.0, %v319_v21 }
  0x72   :  { %1311 = vmatprep.subr.msk.bf16.mxu0 %vm1310_vm5, %v1309_v34 }
  0x75   :  { %1314 = vmatpush1.bf16.msk.msra.mxu0 %vm1310_vm5, %v1312_v35  ;;  %v321_v35 = vmul.f32 %v320_v22, %v319_v21 }
  0x77   :  { %v326_v5 = vrot.slane %v321_v35, %v1559_v16 }
  0x78   :  { %1166 = vmatmul.mubr.msk.f32.vlgmr.msra.gmra.mrb[0].mxu0 %vm158_vm6, %v1161_v48 }
  0x79   :  { %654 = vmatprep.mubr.f32.mxu0 %v1981_v1 }
  0x99   :  { %v315_v36 = vpop.permute.xlu0 %314 }
  0x9f   :  { %v1718_v38 = vpop.trf.xlu1 }
  0xa3   :  { %v1725_v48 = vpop.trf.xlu1 }
  0xa7   :  { %v1729_v1 = vpop.trf.xlu1 }
  0xab   :  { %v1734_v28 = vpop.trf.xlu1 }
  0xaf   :  { %v1738_v37 = vpop.trf.xlu1 }
  0xb3   :  { %v1742_v35 = vpop.trf.xlu1 }
  0xb8   :  { %v365_v44 = vpop.trf.xlu0 }
  0xbc   :  { %v366_v26 = vpop.trf.xlu0 }
  0xc0   :  { %v367_v57 = vpop.trf.xlu0 }
  0xc4   :  { %v368_v58 = vpop.trf.xlu0 }
  0xc8   :  { %v1714_v63 = vpop.trf.xlu0 }
  0xcc   :  { %v1716_v47 = vpop.trf.xlu0 }
  0xd0   :  { %v1720_v15 = vpop.trf.xlu0 }
  0xd4   :  { %v1727_v34 = vpop.trf.xlu0 }
  0xd8   :  { %v1732_v0 = vpop.trf.xlu0 }
  0xdc   :  { %v1736_v53 = vpop.trf.xlu0 }
  0xe0   :  { %v1740_v23 = vpop.trf.xlu0 }
  0xe4   :  { %v376_v13 = vpop.trf.xlu0 }
 0x14b   :  { %v306_v46 = vpop.f32.mrb[0].mxu0 }
 0x14c   :  { %v317_v45 = vmul.f32 %v315_v36, %v306_v46  ;;  %v308_v33 = vpop.f32.mrb[1].mxu0  ;;  %v1744_v46 = vpop.trf.xlu1 }
 0x14d   :  { %v318_v6 = vmul.f32 %v315_v36, %v308_v33 }
 0x14e   :  { %v328_v14 = vmul.f32 %v326_v5, %v317_v45  ;;  %v338_v5 = vmul.f32 %v336_v12, %v317_v45 }
 0x150   :  { %v329_v54 = vmul.f32 %v328_v14, %v317_v45  ;;  %v1167_v14 = vld [vmem:[%s1977_s3] ss:$0 sm:$0xff] }
 0x152   :  { %v330_v43 = vsub.f32 %v318_v6, %v329_v54  ;;  %v377_v54 = vpop.trf.xlu0 }
 0x154   :  { %v331_v22 = vmax.f32 %v330_v43, 0.0  ;;  %v404_v43 = vpop.trf.xlu1 }
 0x156   :  { %v340_v27 = vadd.f32 1e-06, %v331_v22  ;;  %v378_v16 = vpop.trf.xlu0 }
 0x158   :  { %1328 = vrsqrt.f32 %v340_v27  ;;  %v2017_v27 = vmov 0.0   ;;  %v405_v36 = vpop.trf.xlu1 }
 0x15a   :  { %v379_v12 = vpop.trf.xlu0 }
 0x15e   :  { %v380_v45 = vpop.trf.xlu0 }
 0x162   :  { %v1329_v33 = vpop.eup %1328 }
 0x163   :  { %v348_v6 = vmul.f32 %v1329_v33, %v1167_v14 }
 0x165   :  { %590 = vmatprep.subr.mxu0 %v348_v6  ;;  %1315 = vmatprep.subr.mxu1 %v348_v6 }
 0x166   :  { %591 = vmatpush1.msra.mxu0 %v338_v5  ;;  %1316 = vmatpush1.msra.mxu1 %v338_v5 }
 0x167   :  { %1168 = vmatmul.mubr.msk.f32.vlgmr.msra.gmra.mrb[2].mxu0 %vm445_vm7, %v365_v44  ;;  %1179 = vmatmul.mubr.msk.f32.vlgmr.msra.gmra.mrb[0].mxu1 %vm445_vm7, %v376_v13  ;;  %v406_v13 = vpop.trf.xlu1 }
 0x168   :  { %660 = vmatprep.mubr.f32.mxu0 %v2017_v27  ;;  %726 = vmatprep.mubr.f32.mxu1 %v2017_v27 }
 0x16b   :  { %1169 = vmatmul.mubr.msk.f32.gmra.mrb[4].mxu0 %vm445_vm7, %v366_v26  ;;  %1180 = vmatmul.mubr.msk.f32.gmra.mrb[2].mxu1 %vm445_vm7, %v377_v54  ;;  %v407_v44 = vpop.trf.xlu1 }
 0x16c   :  { %666 = vmatprep.mubr.f32.mxu0 %v2017_v27  ;;  %732 = vmatprep.mubr.f32.mxu1 %v2017_v27 }
 0x16f   :  { %1170 = vmatmul.mubr.msk.f32.gmra.mrb[6].mxu0 %vm445_vm7, %v367_v57  ;;  %1181 = vmatmul.mubr.msk.f32.gmra.mrb[4].mxu1 %vm445_vm7, %v378_v16  ;;  %v408_v26 = vpop.trf.xlu1 }
 0x170   :  { %672 = vmatprep.mubr.f32.mxu0 %v2017_v27  ;;  %738 = vmatprep.mubr.f32.mxu1 %v2017_v27 }
 0x173   :  { %1171 = vmatmul.mubr.msk.f32.gmra.mrb[8].mxu0 %vm445_vm7, %v368_v58  ;;  %1182 = vmatmul.mubr.msk.f32.gmra.mrb[6].mxu1 %vm445_vm7, %v379_v12  ;;  %v409_v57 = vpop.trf.xlu1  ;;  %v1863_v12 = vld [vmem:[%s1979_s5] ss:$0 sm:$0xff]  ;;  %s1385_s5 = smov [#allocation5]  }
 0x174   :  { %678 = vmatprep.mubr.f32.mxu0 %v2017_v27  ;;  %744 = vmatprep.mubr.f32.mxu1 %v2017_v27  ;;  %s1147_s16 = sshll.u32 %s1385_s5, 4  ;;  %s1148_s16 = int_to_ptr.vmem [resolvable:$true] %s1147_s16 }
 0x175   :  { %s1352_s17 = scalar_lea.vmem %s1148_s16, 6144  ;;  %p1357_p9 = scmp.lt.s32.totalorder %s1148_s16, %s1148_s16 }
 0x176   :  { %p1353_p8 = scmp.ne.s32.totalorder %s1148_s16, %s1352_s17  ;;  %p1358_p10 = scmp.lt.s32.totalorder %s1352_s17, %s1352_s17 }
 0x177   :  { %1172 = vmatmul.mubr.msk.f32.gmra.mrb[10].mxu0 %vm445_vm7, %v1714_v63  ;;  %1183 = vmatmul.mubr.msk.f32.gmra.mrb[8].mxu1 %vm445_vm7, %v380_v45  ;;  %v410_v58 = vpop.trf.xlu1 }
 0x178   :  { %684 = vmatprep.mubr.f32.mxu0 %v2017_v27  ;;  %750 = vmatprep.mubr.f32.mxu1 %v2017_v27  ;;  %p1359_p11 = por %p1358_p10, %p1357_p9 }
 0x17a   :  { %p1360_p12 = pnand %p1359_p11, %p1353_p8 }
 0x17b   :  { %1173 = vmatmul.mubr.msk.f32.gmra.mrb[12].mxu0 %vm445_vm7, %v1716_v47  ;;  %1184 = vmatmul.mubr.msk.f32.gmra.mrb[10].mxu1 %vm445_vm7, %v1718_v38 }
 0x17c   :  { %690 = vmatprep.mubr.f32.mxu0 %v2017_v27  ;;  %756 = vmatprep.mubr.f32.mxu1 %v2017_v27 }
 0x17f   :  { %1174 = vmatmul.mubr.msk.f32.gmra.mrb[14].mxu0 %vm445_vm7, %v1720_v15  ;;  %1185 = vmatmul.mubr.msk.f32.gmra.mrb[12].mxu1 %vm445_vm7, %v1725_v48 }
 0x180   :  { %696 = vmatprep.mubr.f32.mxu0 %v2017_v27  ;;  %762 = vmatprep.mubr.f32.mxu1 %v2017_v27 }
 0x183   :  { %1175 = vmatmul.mubr.msk.f32.gmra.mrb[16].mxu0 %vm445_vm7, %v1727_v34  ;;  %1186 = vmatmul.mubr.msk.f32.gmra.mrb[14].mxu1 %vm445_vm7, %v1729_v1  ;;  %v411_v1 = vpop.trf.xlu1 }
 0x184   :  { %702 = vmatprep.mubr.f32.mxu0 %v2017_v27  ;;  %768 = vmatprep.mubr.f32.mxu1 %v2017_v27 }
 0x187   :  { %1176 = vmatmul.mubr.msk.f32.gmra.mrb[18].mxu0 %vm445_vm7, %v1732_v0  ;;  %1187 = vmatmul.mubr.msk.f32.gmra.mrb[16].mxu1 %vm445_vm7, %v1734_v28 }
 0x188   :  { %708 = vmatprep.mubr.f32.mxu0 %v2017_v27  ;;  %774 = vmatprep.mubr.f32.mxu1 %v2017_v27 }
 0x18b   :  { %1177 = vmatmul.mubr.msk.f32.gmra.mrb[20].mxu0 %vm445_vm7, %v1736_v53  ;;  %1188 = vmatmul.mubr.msk.f32.gmra.mrb[18].mxu1 %vm445_vm7, %v1738_v37  ;;  %v412_v53 = vpop.trf.xlu1 }
 0x18c   :  { %714 = vmatprep.mubr.f32.mxu0 %v2017_v27  ;;  %780 = vmatprep.mubr.f32.mxu1 %v2017_v27 }
 0x18f   :  { %1178 = vmatmul.mubr.msk.f32.gmra.mrb[22].mxu0 %vm445_vm7, %v1740_v23  ;;  %1189 = vmatmul.mubr.msk.f32.gmra.mrb[20].mxu1 %vm445_vm7, %v1742_v35  ;;  %v429_v37 = vpop.trf.xlu1 }
 0x190   :  { %786 = vmatprep.mubr.f32.mxu1 %v2017_v27 }
 0x193   :  { %1190 = vmatmul.mubr.msk.f32.gmra.mrb[22].mxu1 %vm445_vm7, %v1744_v46  ;;  %v430_v23 = vpop.trf.xlu1 }
 0x194   :  { %792 = vmatprep.mubr.f32.mxu1 %v2017_v27 }
 0x197   :  { %1191 = vmatmul.mubr.msk.f32.gmra.mrb[24].mxu1 %vm445_vm7, %v404_v43  ;;  %v431_v28 = vpop.trf.xlu1 }
 0x198   :  { %798 = vmatprep.mubr.f32.mxu1 %v2017_v27 }
 0x19b   :  { %1192 = vmatmul.mubr.msk.f32.gmra.mrb[26].mxu1 %vm445_vm7, %v405_v36  ;;  %v432_v0 = vpop.trf.xlu1 }
 0x19c   :  { %804 = vmatprep.mubr.f32.mxu1 %v2017_v27 }
 0x19f   :  { %1193 = vmatmul.mubr.msk.f32.gmra.mrb[28].mxu1 %vm445_vm7, %v406_v13  ;;  %v433_v63 = vpop.trf.xlu1 }
 0x1a0   :  { %810 = vmatprep.mubr.f32.mxu1 %v2017_v27 }
 0x1a3   :  { %1194 = vmatmul.mubr.msk.f32.gmra.mrb[30].mxu1 %vm445_vm7, %v407_v44  ;;  %v434_v47 = vpop.trf.xlu1 }
 0x1a4   :  { %816 = vmatprep.mubr.f32.mxu1 %v2017_v27 }
 0x1a7   :  { %1195 = vmatmul.mubr.msk.f32.gmra.mrb[32].mxu1 %vm445_vm7, %v408_v26  ;;  %v435_v38 = vpop.trf.xlu1 }
 0x1a8   :  { %822 = vmatprep.mubr.f32.mxu1 %v2017_v27 }
 0x1ab   :  { %1196 = vmatmul.mubr.msk.f32.gmra.mrb[34].mxu1 %vm445_vm7, %v409_v57  ;;  %v436_v15 = vpop.trf.xlu1 }
 0x1ac   :  { %828 = vmatprep.mubr.f32.mxu1 %v2017_v27 }
 0x1af   :  { %1197 = vmatmul.mubr.msk.f32.gmra.mrb[36].mxu1 %vm445_vm7, %v410_v58  ;;  %v437_v21 = vpop.trf.xlu1 }
 0x1b0   :  { %834 = vmatprep.mubr.f32.mxu1 %v2017_v27 }
 0x1b3   :  { %1198 = vmatmul.mubr.msk.f32.gmra.mrb[38].mxu1 %vm445_vm7, %v411_v1  ;;  %v438_v48 = vpop.trf.xlu1 }
 0x1b4   :  { %840 = vmatprep.mubr.f32.mxu1 %v2017_v27 }
 0x1b7   :  { %1199 = vmatmul.mubr.msk.f32.gmra.mrb[40].mxu1 %vm445_vm7, %v412_v53  ;;  %v439_v34 = vpop.trf.xlu1 }
 0x1b8   :  { %846 = vmatprep.mubr.f32.mxu1 %v2017_v27 }
 0x1bb   :  { %1200 = vmatmul.mubr.msk.f32.gmra.mrb[42].mxu1 %vm445_vm7, %v429_v37  ;;  %v440_v22 = vpop.trf.xlu1 }
 0x1bc   :  { %852 = vmatprep.mubr.f32.mxu1 %v2017_v27 }
 0x1bf   :  { %1201 = vmatmul.mubr.msk.f32.gmra.mrb[44].mxu1 %vm445_vm7, %v430_v23  ;;  %v441_v35 = vpop.trf.xlu1 }
 0x1c0   :  { %858 = vmatprep.mubr.f32.mxu1 %v2017_v27 }
 0x1c3   :  { %1202 = vmatmul.mubr.msk.f32.gmra.mrb[46].mxu1 %vm445_vm7, %v431_v28  ;;  %v442_v46 = vpop.trf.xlu1 }
 0x1c4   :  { %864 = vmatprep.mubr.f32.mxu1 %v2017_v27 }
 0x1c7   :  { %1203 = vmatmul.mubr.msk.f32.gmra.mrb[48].mxu1 %vm445_vm7, %v432_v0  ;;  %v443_v14 = vpop.trf.xlu1 }
 0x1c8   :  { %870 = vmatprep.mubr.f32.mxu1 %v2017_v27 }
 0x1cb   :  { %1204 = vmatmul.mubr.msk.f32.gmra.mrb[50].mxu1 %vm445_vm7, %v433_v63  ;;  %v444_v33 = vpop.trf.xlu1 }
 0x1cc   :  { %876 = vmatprep.mubr.f32.mxu1 %v2017_v27 }
 0x1cf   :  { %1205 = vmatmul.mubr.msk.f32.gmra.mrb[52].mxu1 %vm445_vm7, %v434_v47 }
 0x1d0   :  { %882 = vmatprep.mubr.f32.mxu1 %v2017_v27 }
 0x1d3   :  { %1206 = vmatmul.mubr.msk.f32.gmra.mrb[54].mxu1 %vm445_vm7, %v435_v38 }
 0x1d4   :  { %888 = vmatprep.mubr.f32.mxu1 %v2017_v27 }
 0x1d7   :  { %1207 = vmatmul.mubr.msk.f32.gmra.mrb[56].mxu1 %vm445_vm7, %v436_v15 }
 0x1d8   :  { %894 = vmatprep.mubr.f32.mxu1 %v2017_v27 }
 0x1db   :  { %1208 = vmatmul.mubr.msk.f32.gmra.mrb[58].mxu1 %vm445_vm7, %v437_v21 }
 0x1dc   :  { %900 = vmatprep.mubr.f32.mxu1 %v2017_v27 }
 0x1df   :  { %1209 = vmatmul.mubr.msk.f32.gmra.mrb[60].mxu1 %vm445_vm7, %v438_v48 }
 0x1e0   :  { %906 = vmatprep.mubr.f32.mxu1 %v2017_v27 }
 0x1e3   :  { %1210 = vmatmul.mubr.msk.f32.gmra.mrb[62].mxu1 %vm445_vm7, %v439_v34 }
 0x1e4   :  { %912 = vmatprep.mubr.f32.mxu1 %v2017_v27 }
 0x1e7   :  { %1211 = vmatmul.mubr.msk.f32.gmra.mrb[64].mxu1 %vm445_vm7, %v440_v22 }
 0x1e8   :  { %918 = vmatprep.mubr.f32.mxu1 %v2017_v27 }
 0x1eb   :  { %1212 = vmatmul.mubr.msk.f32.gmra.mrb[66].mxu1 %vm445_vm7, %v441_v35 }
 0x1ec   :  { %924 = vmatprep.mubr.f32.mxu1 %v2017_v27 }
 0x1ef   :  { %1213 = vmatmul.mubr.msk.f32.gmra.mrb[68].mxu1 %vm445_vm7, %v442_v46 }
 0x1f0   :  { %930 = vmatprep.mubr.f32.mxu1 %v2017_v27 }
 0x1f3   :  { %1214 = vmatmul.mubr.msk.f32.gmra.mrb[70].mxu1 %vm445_vm7, %v443_v14 }
 0x1f4   :  { %936 = vmatprep.mubr.f32.mxu1 %v2017_v27 }
 0x1f7   :  { %1215 = vmatmul.mubr.msk.f32.gmra.mrb[72].mxu1 %vm445_vm7, %v444_v33 }
 0x23a   :  { %v656_v54 = vpop.f32.mrb[2].mxu0  ;;  %v722_v6 = vpop.f32.mrb[0].mxu1 }
 0x23b   :  { %v943_v5 = vsub.f32 %v1437_v2, %v656_v54  ;;  %v954_v43 = vsub.f32 %v1487_v32, %v722_v6  ;;  %v658_v16 = vpop.f32.mrb[3].mxu0  ;;  %v724_v36 = vpop.f32.mrb[1].mxu1 }
 0x23d   :  { %v991_v13 = vmul.f32 %v943_v5, %v658_v16  ;;  %v1002_v45 = vmul.f32 %v954_v43, %v724_v36 }
 0x23e   :  { %v662_v44 = vpop.f32.mrb[4].mxu0  ;;  %v728_v26 = vpop.f32.mrb[2].mxu1 }
 0x23f   :  { %v1046_v27 = vadd.f32 %v1863_v12, %v991_v13  ;;  %v1057_v57 = vadd.f32 %v1863_v12, %v1002_v45  ;;  %v944_v58 = vsub.f32 %v1439_v3, %v662_v44  ;;  %v955_v2 = vsub.f32 %v1501_v39, %v728_v26  ;;  %v664_v32 = vpop.f32.mrb[5].mxu0  ;;  %v730_v1 = vpop.f32.mrb[3].mxu1 }
 0x241   :  { %1094 = vst [vmem:[#allocation5] sm:$0xff] %v1046_v27  ;;  %1105 = vst [vmem:[#allocation5 + $0x58] sm:$0xff] %v1057_v57  ;;  %v992_v53 = vmul.f32 %v944_v58, %v664_v32  ;;  %v1003_v37 = vmul.f32 %v955_v2, %v730_v1 }
 0x242   :  { %v668_v23 = vpop.f32.mrb[6].mxu0  ;;  %v734_v28 = vpop.f32.mrb[4].mxu1 }
 0x243   :  { %v1047_v0 = vadd.f32 %v1863_v12, %v992_v53  ;;  %v1058_v63 = vadd.f32 %v1863_v12, %v1003_v37  ;;  %v945_v47 = vsub.f32 %v1441_v4, %v668_v23  ;;  %v956_v38 = vsub.f32 %v1503_v40, %v734_v28  ;;  %v670_v15 = vpop.f32.mrb[7].mxu0  ;;  %v736_v3 = vpop.f32.mrb[5].mxu1 }
 0x245   :  { %1095 = vst [vmem:[#allocation5 + $0x8] sm:$0xff] %v1047_v0  ;;  %1106 = vst [vmem:[#allocation5 + $0x60] sm:$0xff] %v1058_v63  ;;  %v993_v39 = vmul.f32 %v945_v47, %v670_v15  ;;  %v1004_v21 = vmul.f32 %v956_v38, %v736_v3 }
 0x246   :  { %v674_v48 = vpop.f32.mrb[8].mxu0  ;;  %v740_v34 = vpop.f32.mrb[6].mxu1 }
 0x247   :  { %v1048_v22 = vadd.f32 %v1863_v12, %v993_v39  ;;  %v1059_v35 = vadd.f32 %v1863_v12, %v1004_v21  ;;  %v946_v46 = vsub.f32 %v1447_v7, %v674_v48  ;;  %v957_v14 = vsub.f32 %v1518_v49, %v740_v34  ;;  %v676_v33 = vpop.f32.mrb[9].mxu0  ;;  %v742_v4 = vpop.f32.mrb[7].mxu1 }
 0x249   :  { %1096 = vst [vmem:[#allocation5 + $0x10] sm:$0xff] %v1048_v22  ;;  %1107 = vst [vmem:[#allocation5 + $0x68] sm:$0xff] %v1059_v35  ;;  %v994_v40 = vmul.f32 %v946_v46, %v676_v33  ;;  %v1005_v54 = vmul.f32 %v957_v14, %v742_v4 }
 0x24a   :  { %v680_v6 = vpop.f32.mrb[10].mxu0  ;;  %v746_v5 = vpop.f32.mrb[8].mxu1 }
 0x24b   :  { %v1049_v43 = vadd.f32 %v1863_v12, %v994_v40  ;;  %v1060_v16 = vadd.f32 %v1863_v12, %v1005_v54  ;;  %v947_v36 = vsub.f32 %v1451_v9, %v680_v6  ;;  %v958_v13 = vsub.f32 %v1520_v50, %v746_v5  ;;  %v682_v45 = vpop.f32.mrb[11].mxu0  ;;  %v748_v7 = vpop.f32.mrb[9].mxu1 }
 0x24d   :  { %1097 = vst [vmem:[#allocation5 + $0x18] sm:$0xff] %v1049_v43  ;;  %1108 = vst [vmem:[#allocation5 + $0x70] sm:$0xff] %v1060_v16  ;;  %v995_v49 = vmul.f32 %v947_v36, %v682_v45  ;;  %v1006_v44 = vmul.f32 %v958_v13, %v748_v7 }
 0x24e   :  { %v686_v26 = vpop.f32.mrb[12].mxu0  ;;  %v752_v27 = vpop.f32.mrb[10].mxu1 }
 0x24f   :  { %v1050_v57 = vadd.f32 %v1863_v12, %v995_v49  ;;  %v1061_v58 = vadd.f32 %v1863_v12, %v1006_v44  ;;  %v948_v2 = vsub.f32 %v1453_v10, %v686_v26  ;;  %v959_v32 = vsub.f32 %v1528_v55, %v752_v27  ;;  %v688_v1 = vpop.f32.mrb[13].mxu0  ;;  %v754_v9 = vpop.f32.mrb[11].mxu1 }
 0x251   :  { %1098 = vst [vmem:[#allocation5 + $0x20] sm:$0xff] %v1050_v57  ;;  %1109 = vst [vmem:[#allocation5 + $0x78] sm:$0xff] %v1061_v58  ;;  %v996_v50 = vmul.f32 %v948_v2, %v688_v1  ;;  %v1007_v53 = vmul.f32 %v959_v32, %v754_v9 }
 0x252   :  { %v692_v37 = vpop.f32.mrb[14].mxu0  ;;  %v758_v23 = vpop.f32.mrb[12].mxu1 }
 0x253   :  { %v1051_v28 = vadd.f32 %v1863_v12, %v996_v50  ;;  %v1062_v0 = vadd.f32 %v1863_v12, %v1007_v53  ;;  %v949_v63 = vsub.f32 %v1463_v17, %v692_v37  ;;  %v960_v47 = vsub.f32 %v1530_v56, %v758_v23  ;;  %v694_v38 = vpop.f32.mrb[15].mxu0  ;;  %v760_v10 = vpop.f32.mrb[13].mxu1 }
 0x255   :  { %1099 = vst [vmem:[#allocation5 + $0x28] sm:$0xff] %v1051_v28  ;;  %1110 = vst [vmem:[#allocation5 + $0x80] sm:$0xff] %v1062_v0  ;;  %v997_v55 = vmul.f32 %v949_v63, %v694_v38  ;;  %v1008_v15 = vmul.f32 %v960_v47, %v760_v10 }
 0x256   :  { %v698_v3 = vpop.f32.mrb[16].mxu0  ;;  %v764_v39 = vpop.f32.mrb[14].mxu1 }
 0x257   :  { %v1052_v21 = vadd.f32 %v1863_v12, %v997_v55  ;;  %v1063_v48 = vadd.f32 %v1863_v12, %v1008_v15  ;;  %v950_v34 = vsub.f32 %v1465_v18, %v698_v3  ;;  %v961_v22 = vsub.f32 %v1538_v61, %v764_v39  ;;  %v700_v35 = vpop.f32.mrb[17].mxu0  ;;  %v766_v17 = vpop.f32.mrb[15].mxu1 }
 0x259   :  { %1100 = vst [vmem:[#allocation5 + $0x30] sm:$0xff] %v1052_v21  ;;  %1111 = vst [vmem:[#allocation5 + $0x88] sm:$0xff] %v1063_v48  ;;  %v998_v56 = vmul.f32 %v950_v34, %v700_v35  ;;  %v1009_v46 = vmul.f32 %v961_v22, %v766_v17 }
 0x25a   :  { %v704_v14 = vpop.f32.mrb[18].mxu0  ;;  %v770_v33 = vpop.f32.mrb[16].mxu1 }
 0x25b   :  { %v1053_v4 = vadd.f32 %v1863_v12, %v998_v56  ;;  %v1064_v40 = vadd.f32 %v1863_v12, %v1009_v46  ;;  %v951_v54 = vsub.f32 %v1473_v24, %v704_v14  ;;  %v962_v6 = vsub.f32 %v1540_v62, %v770_v33  ;;  %v706_v5 = vpop.f32.mrb[19].mxu0  ;;  %v772_v18 = vpop.f32.mrb[17].mxu1 }
 0x25d   :  { %1101 = vst [vmem:[#allocation5 + $0x38] sm:$0xff] %v1053_v4  ;;  %1112 = vst [vmem:[#allocation5 + $0x90] sm:$0xff] %v1064_v40  ;;  %v999_v61 = vmul.f32 %v951_v54, %v706_v5  ;;  %v1010_v43 = vmul.f32 %v962_v6, %v772_v18 }
 0x25e   :  { %v710_v16 = vpop.f32.mrb[20].mxu0  ;;  %v776_v36 = vpop.f32.mrb[18].mxu1 }
 0x25f   :  { %v1054_v13 = vadd.f32 %v1863_v12, %v999_v61  ;;  %v1065_v45 = vadd.f32 %v1863_v12, %v1010_v43  ;;  %v952_v7 = vsub.f32 %v1475_v25, %v710_v16  ;;  %v963_v49 = vsub.f32 %v1548_v8, %v776_v36  ;;  %v712_v44 = vpop.f32.mrb[21].mxu0  ;;  %v778_v24 = vpop.f32.mrb[19].mxu1 }
 0x261   :  { %1102 = vst [vmem:[#allocation5 + $0x40] sm:$0xff] %v1054_v13  ;;  %1113 = vst [vmem:[#allocation5 + $0x98] sm:$0xff] %v1065_v45  ;;  %v1000_v62 = vmul.f32 %v952_v7, %v712_v44  ;;  %v1011_v26 = vmul.f32 %v963_v49, %v778_v24 }
 0x262   :  { %v716_v27 = vpop.f32.mrb[22].mxu0  ;;  %v782_v57 = vpop.f32.mrb[20].mxu1 }
 0x263   :  { %v1055_v58 = vadd.f32 %v1863_v12, %v1000_v62  ;;  %v1066_v2 = vadd.f32 %v1863_v12, %v1011_v26  ;;  %v953_v32 = vsub.f32 %v1485_v31, %v716_v27  ;;  %v964_v1 = vsub.f32 %v1550_v11, %v782_v57  ;;  %v718_v9 = vpop.f32.mrb[23].mxu0  ;;  %v784_v25 = vpop.f32.mrb[21].mxu1 }
 0x265   :  { %1103 = vst [vmem:[#allocation5 + $0x48] sm:$0xff] %v1055_v58  ;;  %1114 = vst [vmem:[#allocation5 + $0xa0] sm:$0xff] %v1066_v2  ;;  %v1001_v8 = vmul.f32 %v953_v32, %v718_v9  ;;  %v1012_v50 = vmul.f32 %v964_v1, %v784_v25  ;;  %v2018_v58 = vld [vmem:[#allocation8_spill] sm:$0xff]  ;;  %v2019_v25 = vld [vmem:[#allocation9_spill] sm:$0xff] }
 0x266   :  { %v788_v53 = vpop.f32.mrb[22].mxu1 }
 0x267   :  { %v1056_v37 = vadd.f32 %v1863_v12, %v1001_v8  ;;  %v1067_v23 = vadd.f32 %v1863_v12, %v1012_v50  ;;  %v965_v28 = vsub.f32 %v1561_v19, %v788_v53  ;;  %v790_v0 = vpop.f32.mrb[23].mxu1 }
 0x269   :  { %1104 = vst [vmem:[#allocation5 + $0x50] sm:$0xff] %v1056_v37  ;;  %1115 = vst [vmem:[#allocation5 + $0xa8] sm:$0xff] %v1067_v23  ;;  %v1013_v63 = vmul.f32 %v965_v28, %v790_v0  ;;  %v2020_v23 = vld [vmem:[#allocation10_spill] sm:$0xff] }
 0x26a   :  { %v794_v31 = vpop.f32.mrb[24].mxu1 }
 0x26b   :  { %v1068_v11 = vadd.f32 %v1863_v12, %v1013_v63  ;;  %v966_v47 = vsub.f32 %v1563_v20, %v794_v31  ;;  %v796_v38 = vpop.f32.mrb[25].mxu1 }
 0x26d   :  { %1116 = vst [vmem:[#allocation5 + $0xb0] sm:$0xff] %v1068_v11  ;;  %v1014_v10 = vmul.f32 %v966_v47, %v796_v38  ;;  %v2021_v47 = vld [vmem:[#allocation11_spill] sm:$0xff] }
 0x26e   :  { %v800_v55 = vpop.f32.mrb[26].mxu1 }
 0x26f   :  { %v1069_v15 = vadd.f32 %v1863_v12, %v1014_v10  ;;  %v967_v3 = vsub.f32 %v1573_v29, %v800_v55  ;;  %v802_v39 = vpop.f32.mrb[27].mxu1 }
 0x271   :  { %1117 = vst [vmem:[#allocation5 + $0xb8] sm:$0xff] %v1069_v15  ;;  %v1015_v19 = vmul.f32 %v967_v3, %v802_v39  ;;  %v2022_v39 = vld [vmem:[#allocation12_spill] sm:$0xff] }
 0x272   :  { %v806_v21 = vpop.f32.mrb[28].mxu1 }
 0x273   :  { %v1070_v48 = vadd.f32 %v1863_v12, %v1015_v19  ;;  %v968_v34 = vsub.f32 %v1575_v30, %v806_v21  ;;  %v808_v22 = vpop.f32.mrb[29].mxu1 }
 0x275   :  { %1118 = vst [vmem:[#allocation5 + $0xc0] sm:$0xff] %v1070_v48  ;;  %v1016_v35 = vmul.f32 %v968_v34, %v808_v22 }
 0x276   :  { %v812_v20 = vpop.f32.mrb[30].mxu1 }
 0x277   :  { %v1071_v17 = vadd.f32 %v1863_v12, %v1016_v35  ;;  %v969_v56 = vsub.f32 %v1588_v41, %v812_v20  ;;  %v814_v46 = vpop.f32.mrb[31].mxu1  ;;  %v2023_v35 = vld [vmem:[#allocation13_spill] sm:$0xff] }
 0x279   :  { %1119 = vst [vmem:[#allocation5 + $0xc8] sm:$0xff] %v1071_v17  ;;  %v1017_v14 = vmul.f32 %v969_v56, %v814_v46 }
 0x27a   :  { %v818_v29 = vpop.f32.mrb[32].mxu1 }
 0x27b   :  { %v1072_v33 = vadd.f32 %v1863_v12, %v1017_v14  ;;  %v970_v4 = vsub.f32 %v1590_v42, %v818_v29  ;;  %v820_v40 = vpop.f32.mrb[33].mxu1  ;;  %v2024_v29 = vld [vmem:[#allocation14_spill] sm:$0xff] }
 0x27d   :  { %1120 = vst [vmem:[#allocation5 + $0xd0] sm:$0xff] %v1072_v33  ;;  %v1018_v54 = vmul.f32 %v970_v4, %v820_v40 }
 0x27e   :  { %v824_v30 = vpop.f32.mrb[34].mxu1 }
 0x27f   :  { %v1073_v6 = vadd.f32 %v1863_v12, %v1018_v54  ;;  %v971_v5 = vsub.f32 %v1601_v51, %v824_v30  ;;  %v826_v18 = vpop.f32.mrb[35].mxu1 }
 0x281   :  { %1121 = vst [vmem:[#allocation5 + $0xd8] sm:$0xff] %v1073_v6  ;;  %v1019_v61 = vmul.f32 %v971_v5, %v826_v18  ;;  %v2025_v6 = vld [vmem:[#allocation15_spill] sm:$0xff] }
 0x282   :  { %v830_v41 = vpop.f32.mrb[36].mxu1 }
 0x283   :  { %v1074_v43 = vadd.f32 %v1863_v12, %v1019_v61  ;;  %v972_v16 = vsub.f32 %v1603_v52, %v830_v41  ;;  %v832_v36 = vpop.f32.mrb[37].mxu1 }
 0x285   :  { %1122 = vst [vmem:[#allocation5 + $0xe0] sm:$0xff] %v1074_v43  ;;  %v1020_v13 = vmul.f32 %v972_v16, %v832_v36  ;;  %v2026_v16 = vld [vmem:[#allocation16_spill] sm:$0xff] }
 0x286   :  { %v836_v42 = vpop.f32.mrb[38].mxu1 }
 0x287   :  { %v1075_v45 = vadd.f32 %v1863_v12, %v1020_v13  ;;  %v973_v7 = vsub.f32 %v1611_v59, %v836_v42  ;;  %v838_v49 = vpop.f32.mrb[39].mxu1 }
 0x289   :  { %1123 = vst [vmem:[#allocation5 + $0xe8] sm:$0xff] %v1075_v45  ;;  %v1021_v44 = vmul.f32 %v973_v7, %v838_v49  ;;  %v2027_v49 = vld [vmem:[#allocation17_spill] sm:$0xff] }
 0x28a   :  { %v842_v51 = vpop.f32.mrb[40].mxu1 }
 0x28b   :  { %v1076_v24 = vadd.f32 %v1863_v12, %v1021_v44  ;;  %v974_v62 = vsub.f32 %v1613_v60, %v842_v51  ;;  %v844_v26 = vpop.f32.mrb[41].mxu1 }
 0x28d   :  { %1124 = vst [vmem:[#allocation5 + $0xf0] sm:$0xff] %v1076_v24  ;;  %v1022_v27 = vmul.f32 %v974_v62, %v844_v26 }
 0x28e   :  { %v848_v52 = vpop.f32.mrb[42].mxu1 }
 0x28f   :  { %v1077_v57 = vadd.f32 %v1863_v12, %v1022_v27  ;;  %v975_v2 = vsub.f32 %v2018_v58, %v848_v52  ;;  %v850_v32 = vpop.f32.mrb[43].mxu1  ;;  %v2028_v27 = vld [vmem:[#allocation18_spill] sm:$0xff] }
 0x291   :  { %1125 = vst [vmem:[#allocation5 + $0xf8] sm:$0xff] %v1077_v57  ;;  %v1023_v1 = vmul.f32 %v975_v2, %v850_v32 }
 0x292   :  { %v854_v59 = vpop.f32.mrb[44].mxu1 }
 0x293   :  { %v1078_v9 = vadd.f32 %v1863_v12, %v1023_v1  ;;  %v976_v8 = vsub.f32 %v2019_v25, %v854_v59  ;;  %v856_v50 = vpop.f32.mrb[45].mxu1  ;;  %v2029_v1 = vld [vmem:[#allocation19_spill] sm:$0xff] }
 0x295   :  { %1126 = vst [vmem:[#allocation5 + $0x100] sm:$0xff] %v1078_v9  ;;  %v1024_v53 = vmul.f32 %v976_v8, %v856_v50 }
 0x296   :  { %v860_v60 = vpop.f32.mrb[46].mxu1 }
 0x297   :  { %v1079_v37 = vadd.f32 %v1863_v12, %v1024_v53  ;;  %v977_v28 = vsub.f32 %v2020_v23, %v860_v60  ;;  %v862_v0 = vpop.f32.mrb[47].mxu1  ;;  %v2030_v53 = vld [vmem:[#allocation20_spill] sm:$0xff] }
 0x299   :  { %1127 = vst [vmem:[#allocation5 + $0x108] sm:$0xff] %v1079_v37  ;;  %v1025_v63 = vmul.f32 %v977_v28, %v862_v0 }
 0x29a   :  { %v866_v31 = vpop.f32.mrb[48].mxu1 }
 0x29b   :  { %v1080_v11 = vadd.f32 %v1863_v12, %v1025_v63  ;;  %v978_v38 = vsub.f32 %v2021_v47, %v866_v31  ;;  %v868_v10 = vpop.f32.mrb[49].mxu1  ;;  %v2031_v63 = vld [vmem:[#allocation21_spill] sm:$0xff] }
 0x29d   :  { %1128 = vst [vmem:[#allocation5 + $0x110] sm:$0xff] %v1080_v11  ;;  %v1026_v55 = vmul.f32 %v978_v38, %v868_v10 }
 0x29e   :  { %v872_v15 = vpop.f32.mrb[50].mxu1 }
 0x29f   :  { %v1081_v3 = vadd.f32 %v1863_v12, %v1026_v55  ;;  %v979_v19 = vsub.f32 %v2022_v39, %v872_v15  ;;  %v874_v21 = vpop.f32.mrb[51].mxu1  ;;  %v2032_v55 = vld [vmem:[#allocation22_spill] sm:$0xff] }
 0x2a1   :  { %1129 = vst [vmem:[#allocation5 + $0x118] sm:$0xff] %v1081_v3  ;;  %v1027_v48 = vmul.f32 %v979_v19, %v874_v21 }
 0x2a2   :  { %v878_v34 = vpop.f32.mrb[52].mxu1 }
 0x2a3   :  { %v1082_v22 = vadd.f32 %v1863_v12, %v1027_v48  ;;  %v980_v20 = vsub.f32 %v2023_v35, %v878_v34  ;;  %v880_v17 = vpop.f32.mrb[53].mxu1  ;;  %v2033_v48 = vld [vmem:[#allocation23_spill] sm:$0xff] }
 0x2a5   :  { %1130 = vst [vmem:[#allocation5 + $0x120] sm:$0xff] %v1082_v22  ;;  %v1028_v56 = vmul.f32 %v980_v20, %v880_v17 }
 0x2a6   :  { %v884_v46 = vpop.f32.mrb[54].mxu1 }
 0x2a7   :  { %v1083_v14 = vadd.f32 %v1863_v12, %v1028_v56  ;;  %v981_v33 = vsub.f32 %v2024_v29, %v884_v46  ;;  %v886_v4 = vpop.f32.mrb[55].mxu1 }
 0x2a9   :  { %1131 = vst [vmem:[#allocation5 + $0x128] sm:$0xff] %v1083_v14  ;;  %v1029_v40 = vmul.f32 %v981_v33, %v886_v4 }
 0x2aa   :  { %v890_v54 = vpop.f32.mrb[56].mxu1 }
 0x2ab   :  { %v1084_v30 = vadd.f32 %v1863_v12, %v1029_v40  ;;  %v982_v5 = vsub.f32 %v2025_v6, %v890_v54  ;;  %v892_v18 = vpop.f32.mrb[57].mxu1 }
 0x2ad   :  { %1132 = vst [vmem:[#allocation5 + $0x130] sm:$0xff] %v1084_v30  ;;  %v1030_v61 = vmul.f32 %v982_v5, %v892_v18 }
 0x2ae   :  { %v896_v41 = vpop.f32.mrb[58].mxu1 }
 0x2af   :  { %v1085_v43 = vadd.f32 %v1863_v12, %v1030_v61  ;;  %v983_v36 = vsub.f32 %v2026_v16, %v896_v41  ;;  %v898_v13 = vpop.f32.mrb[59].mxu1 }
 0x2b1   :  { %1133 = vst [vmem:[#allocation5 + $0x138] sm:$0xff] %v1085_v43  ;;  %v1031_v42 = vmul.f32 %v983_v36, %v898_v13 }
 0x2b2   :  { %v902_v45 = vpop.f32.mrb[60].mxu1 }
 0x2b3   :  { %v1086_v7 = vadd.f32 %v1863_v12, %v1031_v42  ;;  %v984_v44 = vsub.f32 %v2027_v49, %v902_v45  ;;  %v904_v51 = vpop.f32.mrb[61].mxu1 }
 0x2b5   :  { %1134 = vst [vmem:[#allocation5 + $0x140] sm:$0xff] %v1086_v7  ;;  %v1032_v24 = vmul.f32 %v984_v44, %v904_v51 }
 0x2b6   :  { %v908_v62 = vpop.f32.mrb[62].mxu1 }
 0x2b7   :  { %v1087_v26 = vadd.f32 %v1863_v12, %v1032_v24  ;;  %v985_v52 = vsub.f32 %v2028_v27, %v908_v62  ;;  %v910_v57 = vpop.f32.mrb[63].mxu1 }
 0x2b9   :  { %1135 = vst [vmem:[#allocation5 + $0x148] sm:$0xff] %v1087_v26  ;;  %v1033_v58 = vmul.f32 %v985_v52, %v910_v57 }
 0x2ba   :  { %v914_v2 = vpop.f32.mrb[64].mxu1 }
 0x2bb   :  { %v1088_v32 = vadd.f32 %v1863_v12, %v1033_v58  ;;  %v986_v59 = vsub.f32 %v2029_v1, %v914_v2  ;;  %v916_v9 = vpop.f32.mrb[65].mxu1 }
 0x2bd   :  { %1136 = vst [vmem:[#allocation5 + $0x150] sm:$0xff] %v1088_v32  ;;  %v1034_v25 = vmul.f32 %v986_v59, %v916_v9 }
 0x2be   :  { %v920_v8 = vpop.f32.mrb[66].mxu1 }
 0x2bf   :  { %v1089_v50 = vadd.f32 %v1863_v12, %v1034_v25  ;;  %v987_v60 = vsub.f32 %v2030_v53, %v920_v8  ;;  %v922_v37 = vpop.f32.mrb[67].mxu1 }
 0x2c1   :  { %1137 = vst [vmem:[#allocation5 + $0x158] sm:$0xff] %v1089_v50  ;;  %v1035_v23 = vmul.f32 %v987_v60, %v922_v37 }
 0x2c2   :  { %v926_v28 = vpop.f32.mrb[68].mxu1 }
 0x2c3   :  { %v1090_v0 = vadd.f32 %v1863_v12, %v1035_v23  ;;  %v988_v31 = vsub.f32 %v2031_v63, %v926_v28  ;;  %v928_v11 = vpop.f32.mrb[69].mxu1 }
 0x2c5   :  { %1138 = vst [vmem:[#allocation5 + $0x160] sm:$0xff] %v1090_v0  ;;  %v1036_v47 = vmul.f32 %v988_v31, %v928_v11 }
 0x2c6   :  { %v932_v38 = vpop.f32.mrb[70].mxu1 }
 0x2c7   :  { %v1091_v10 = vadd.f32 %v1863_v12, %v1036_v47  ;;  %v989_v15 = vsub.f32 %v2032_v55, %v932_v38  ;;  %v934_v3 = vpop.f32.mrb[71].mxu1 }
 0x2c9   :  { %1139 = vst [vmem:[#allocation5 + $0x168] sm:$0xff] %v1091_v10  ;;  %v1037_v39 = vmul.f32 %v989_v15, %v934_v3 }
 0x2ca   :  { %v938_v19 = vpop.f32.mrb[72].mxu1 }
 0x2cb   :  { %v1092_v21 = vadd.f32 %v1863_v12, %v1037_v39  ;;  %v990_v34 = vsub.f32 %v2033_v48, %v938_v19  ;;  %v940_v22 = vpop.f32.mrb[73].mxu1 }
 0x2cd   :  { %1140 = vst [vmem:[#allocation5 + $0x170] sm:$0xff] %v1092_v21  ;;  %v1038_v35 = vmul.f32 %v990_v34, %v940_v22 }
 0x2cf   :  { %v1093_v20 = vadd.f32 %v1863_v12, %v1038_v35 }
 0x2d1   :  { %1141 = vst [vmem:[#allocation5 + $0x178] sm:$0xf] %v1093_v20 }
 0x2d2   :  { %1363 = shalt.err (!%p1360_p12)
}
 0x2d3   :  { %s1364_s20 = scalar_lea.hbm %s1980_s6, 6144 }
 0x2d4   :  { %p1365_p13 = scmp.ne.s32.totalorder %s1980_s6, %s1364_s20  ;;  %p1368_p0 = scmp.lt.u32.totalorder %s1364_s20, %s1980_s6 }
 0x2d6   :  { %p1370_p1 = pnand %p1368_p0, %p1365_p13 }
 0x2d8   :  { %1373 = shalt.err (!%p1370_p1)
}
 0x2d9   :  { %1153 = dma.vmem_to_hbm [thread:$0]  %s1148_s16, 6144, %s1980_s6, [#allocation4], %s1379_s7, %s1379_s7, %s1380_s8  }
 0x2da   :  { %1376 = dma.done.wait [#allocation4], 6144  }
 0x2db   :  { %1377 = vsyncadd [#allocation4], 4294961152 }
 0x2dc   :  { %1157 = vsyncpa [#allocation3], 1 }
 0x2dd   :  { %1158 = vsyncpa [#allocation4], 1 }

</bundles_post_ra>
